<compile_context>
chip_gen: v6e
topology: v6e:2x2x1
jax: 0.10.0
libtpu: 0.0.40
codegen_flags: <defaults>
</compile_context>

<pallas_src>
import numpy as np
import jax
import jax.numpy as jnp
from jax import lax
from jax.experimental import pallas as pl
from jax.experimental.pallas import tpu as pltpu

EPSILON = 1e-4  # self.epsilon


def _round_up(x, m):
    return ((x + m - 1) // m) * m


# ----------------------------- Pallas kernel --------------------------------
def ppnet_kernel(f_ref, w1t_ref, b1_ref, w2t_ref, b2_ref,
                 protot_ref, p2_ref, wlt_ref,
                 logits_ref, mind_ref):
    # f_ref: (TB, HW, C) bf16 backbone features for TB batch elements.
    tb, hw, c = f_ref.shape
    p_pad = p2_ref.shape[1]

    f = f_ref[...].reshape(tb * hw, c)                                 # bf16 (TB*HW, C)

    # ---- add_on_layers: Conv1x1 -> ReLU -> Conv1x1 -> Sigmoid (per-pixel matmuls)
    h1 = jnp.dot(f, w1t_ref[...], preferred_element_type=jnp.float32) + b1_ref[...]
    h1 = jnp.maximum(h1, 0.0)                                          # f32
    z = jnp.dot(h1.astype(w2t_ref.dtype), w2t_ref[...],
                preferred_element_type=jnp.float32) + b2_ref[...]
    x = jax.nn.sigmoid(z)                                              # f32 (TB*HW, D)

    # ---- _l2_convolution with 1x1 prototypes: ||x||^2 - 2 x.p + ||p||^2, clamped
    x2_sum = jnp.sum(x * x, axis=1, keepdims=True)                     # f32 (TB*HW, 1)
    xp = jnp.dot(x.astype(protot_ref.dtype), protot_ref[...],
                 preferred_element_type=jnp.float32)                   # f32 (TB*HW, Pp)
    dist = jnp.maximum(x2_sum - 2.0 * xp + p2_ref[...], 0.0)           # (TB*HW, Pp)

    # ---- min_distances = -maxpool(-dist, full spatial window)
    min_d = jnp.min(dist.reshape(tb, hw, p_pad), axis=1)               # (TB, Pp)

    # ---- distance_2_similarity ('log') and last_layer (no bias)
    act = jnp.log((min_d + 1.0) / (min_d + EPSILON))                   # f32 (TB, Pp)
    logits = jnp.dot(act, wlt_ref[...], preferred_element_type=jnp.float32)

    mind_ref[0] = min_d
    logits_ref[0] = logits


def ppnet_pallas(f_flat, w1, b1, w2, b2, proto, p2, wlt, *, tb=8):
    """f_flat: (N, HW, C) float32 backbone features (NHWC flattened)."""
    N, HW, C = f_flat.shape
    P, D = proto.shape
    NC = wlt.shape[1]

    # Lane padding: pad prototype / class dims to full 128-lane vregs so the
    # distance math and the output stores are lane-dense (no masked vst.msk).
    P_pad = _round_up(P, 128)
    NC_pad = _round_up(NC, 128)

    # Batch blocking: TB images per grid step. Size TB so that
    # 2 * TB * HW * C * 2B (double-buffered bf16 feature tile) + weights stays
    # well under ~40 MiB for v7x (64 MiB physical VMEM); v5e/v6e have 128 MiB
    # so the same TB is safe there. Keep >= 2 grid blocks for v7x's 2 TCs.
    tb = max(1, min(tb, N))
    NB = pl.cdiv(N, tb)
    N_pad = NB * tb

    # bf16 MXU operands; f32 accumulation via preferred_element_type in-kernel.
    f_bf = f_flat.astype(jnp.bfloat16)
    if N_pad != N:
        f_bf = jnp.concatenate(
            [f_bf, jnp.zeros((N_pad - N, HW, C), jnp.bfloat16)], axis=0)

    # Pre-transpose constant weights once outside the kernel.
    w1t = w1.T.astype(jnp.bfloat16)                                    # (C, D)
    w2t = w2.T.astype(jnp.bfloat16)                                    # (D, D)
    protot = jnp.zeros((D, P_pad), jnp.bfloat16).at[:, :P].set(
        proto.T.astype(jnp.bfloat16))                                  # (D, P_pad)
    p2_p = jnp.zeros((1, P_pad), jnp.float32).at[:, :P].set(p2)        # (1, P_pad)
    wlt_p = jnp.zeros((P_pad, NC_pad), jnp.float32).at[:P, :NC].set(wlt)

    flops = 2 * N_pad * HW * (C * D + D * D + D * P_pad) + 2 * N_pad * P_pad * NC_pad
    transcendentals = N_pad * HW * D + N_pad * P_pad
    bytes_accessed = (f_bf.size * 2
                      + (w1t.size + w2t.size + protot.size) * 2
                      + (b1.size + b2.size + p2_p.size + wlt_p.size) * 4
                      + N_pad * (NC_pad + P_pad) * 4)

    logits, min_d = pl.pallas_call(
        ppnet_kernel,
        out_shape=(jax.ShapeDtypeStruct((NB, tb, NC_pad), jnp.float32),
                   jax.ShapeDtypeStruct((NB, tb, P_pad), jnp.float32)),
        grid_spec=pltpu.PrefetchScalarGridSpec(
            num_scalar_prefetch=0,
            grid=(NB,),
            in_specs=[
                pl.BlockSpec((tb, HW, C),     lambda b: (b, 0, 0)),   # features (bf16)
                pl.BlockSpec((C, D),          lambda b: (0, 0)),      # add-on W1^T
                pl.BlockSpec((1, D),          lambda b: (0, 0)),      # add-on b1
                pl.BlockSpec((D, D),          lambda b: (0, 0)),      # add-on W2^T
                pl.BlockSpec((1, D),          lambda b: (0, 0)),      # add-on b2
                pl.BlockSpec((D, P_pad),      lambda b: (0, 0)),      # prototypes^T
                pl.BlockSpec((1, P_pad),      lambda b: (0, 0)),      # sum(proto^2)
                pl.BlockSpec((P_pad, NC_pad), lambda b: (0, 0)),      # last layer W^T
            ],
            out_specs=[pl.BlockSpec((1, tb, NC_pad), lambda b: (b, 0, 0)),
                       pl.BlockSpec((1, tb, P_pad),  lambda b: (b, 0, 0))],
        ),
        compiler_params=pltpu.CompilerParams(
            dimension_semantics=("parallel",)),
        cost_estimate=pl.CostEstimate(
            flops=int(flops),
            transcendentals=int(transcendentals),
            bytes_accessed=int(bytes_accessed)),
    )(f_bf, w1t, b1, w2t, b2, protot, p2_p, wlt_p)

    logits = logits.reshape(N_pad, NC_pad)[:N, :NC]
    min_d = min_d.reshape(N_pad, P_pad)[:N, :P]
    return logits, min_d


# ----------------------- backbone (external `features`) ----------------------
# Minimal VGG-like backbone: Conv3x3(pad=1) -> ReLU -> MaxPool2. It plays the
# role of the externally supplied `features` module, so it stays in plain JAX.
# It emits NHWC directly, so no full-feature-map transpose is needed before the
# Pallas kernel.
def backbone_features(x_nchw, wconv, bconv):
    y = lax.conv_general_dilated(
        x_nchw, wconv, window_strides=(1, 1), padding="SAME",
        dimension_numbers=("NCHW", "OIHW", "NHWC"))
    y = y + bconv[None, None, None, :]
    y = jnp.maximum(y, 0.0)
    y = lax.reduce_window(y, -jnp.inf, lax.max,
                          (1, 2, 2, 1), (1, 2, 2, 1), "VALID")
    return y  # (N, H/2, W/2, C_feat)


# ------------------------------ full forward ---------------------------------
def ppnet_forward(x_nchw, params):
    f = backbone_features(x_nchw, params["wconv"], params["bconv"])    # NHWC
    N, H, W, C = f.shape
    f_flat = f.reshape(N, H * W, C)                                    # (N, HW, C)
    logits, min_d = ppnet_pallas(
        f_flat, params["w1"], params["b1"], params["w2"], params["b2"],
        params["proto"], params["p2"], params["wlt"], tb=8)
    proto_presence = None
    return logits, min_d, proto_presence


# ------------------------- plain-JAX reference check -------------------------
# Precision-matched reference: same bf16 MXU operands with f32 accumulation and
# f32 elementwise math as the kernel, so the comparison validates the Pallas
# tiling/reductions rather than bf16-vs-f32 rounding.
def ppnet_reference(x_nchw, params):
    f = backbone_features(x_nchw, params["wconv"], params["bconv"])
    N, H, W, C = f.shape
    f_bf = f.reshape(N, H * W, C).astype(jnp.bfloat16)
    w1t = params["w1"].T.astype(jnp.bfloat16)
    w2t = params["w2"].T.astype(jnp.bfloat16)
    protot = params["proto"].T.astype(jnp.bfloat16)

    h1 = jnp.einsum("nsc,cd->nsd", f_bf, w1t,
                    preferred_element_type=jnp.float32) + params["b1"]
    h1 = jnp.maximum(h1, 0.0)
    z = jnp.einsum("nsd,de->nse", h1.astype(jnp.bfloat16), w2t,
                   preferred_element_type=jnp.float32) + params["b2"]
    x = jax.nn.sigmoid(z)
    x2 = jnp.sum(x * x, axis=-1, keepdims=True)
    xp = jnp.einsum("nsd,dp->nsp", x.astype(jnp.bfloat16), protot,
                    preferred_element_type=jnp.float32)
    dist = jnp.maximum(x2 - 2.0 * xp + params["p2"], 0.0)
    min_d = jnp.min(dist, axis=1)
    act = jnp.log((min_d + 1.0) / (min_d + EPSILON))
    logits = act @ params["wlt"]
    return logits, min_d


# --------------------------------- main ---------------------------------------
if __name__ == "__main__":
    # Small, self-consistent configuration:
    #   img_size=16, prototype_shape=(16, 32, 1, 1), num_classes=4
    N, C_in, IMG = 16, 3, 16
    C_FEAT, D = 32, 32          # backbone out channels == prototype depth
    P, NC = 16, 4               # num_prototypes, num_classes (P % NC == 0)

    key = jax.random.PRNGKey(0)
    k = jax.random.split(key, 6)

    # backbone Conv2d(3->32, k=3) (kaiming-ish), bias 0
    wconv = jax.random.normal(k[0], (C_FEAT, C_in, 3, 3), jnp.float32) * np.sqrt(2.0 / (C_in * 9))
    bconv = jnp.zeros((C_FEAT,), jnp.float32)

    # add_on_layers ('bottleneck' collapses to 2 x Conv1x1 since C_FEAT == D):
    # kaiming_normal_(fan_out) -> std = sqrt(2 / (out_ch * 1 * 1)), bias 0
    w1 = jax.random.normal(k[1], (D, C_FEAT), jnp.float32) * np.sqrt(2.0 / D)
    b1 = jnp.zeros((1, D), jnp.float32)
    w2 = jax.random.normal(k[2], (D, D), jnp.float32) * np.sqrt(2.0 / D)
    b2 = jnp.zeros((1, D), jnp.float32)

    # prototype_vectors ~ U[0,1), shape (P, D, 1, 1) -> squeezed to (P, D)
    proto = jax.random.uniform(k[3], (P, D), jnp.float32)
    p2 = jnp.sum(proto * proto, axis=1)[None, :]                        # (1, P)

    # last_layer weights via set_last_layer_incorrect_connection
    npc = P // (NC * 2)
    class_id = np.zeros((P, NC * 2), np.float32)
    for j in range(P):
        class_id[j, j // npc] = 1.0
    W_last = np.zeros((NC, P), np.float32)
    W_last[:, :P // 2] = class_id.T[:NC, :P // 2]
    W_last[:, P // 2:] = -class_id.T[NC:, P // 2:]
    wlt = jnp.asarray(W_last.T)                                         # (P, NC)

    params = dict(wconv=wconv, bconv=bconv, w1=w1, b1=b1, w2=w2, b2=b2,
                  proto=proto, p2=p2, wlt=wlt)

    x = jax.random.normal(k[4], (N, C_in, IMG, IMG), jnp.float32)       # NCHW input

    logits, min_d, proto_presence = jax.jit(ppnet_forward)(x, params)
    jax.block_until_ready((logits, min_d))

    ref_logits, ref_min_d = jax.jit(ppnet_reference)(x, params)
    np.testing.assert_allclose(np.asarray(min_d), np.asarray(ref_min_d),
                               rtol=2e-2, atol=2e-2)
    np.testing.assert_allclose(np.asarray(logits), np.asarray(ref_logits),
                               rtol=2e-2, atol=2e-2)
    assert logits.shape == (N, NC) and min_d.shape == (N, P) and proto_presence is None

    print("KERNEL_OK")
</pallas_src>

<mosaic_0001>
module attributes {stable_mosaic.version = 11 : i64} {
  func.func @ppnet_kernel(%arg0: i32, %arg1: memref<8x64x32xbf16, #tpu.memory_space<vmem>>, %arg2: memref<32x32xbf16, #tpu.memory_space<vmem>>, %arg3: memref<1x32xf32, #tpu.memory_space<vmem>>, %arg4: memref<32x32xbf16, #tpu.memory_space<vmem>>, %arg5: memref<1x32xf32, #tpu.memory_space<vmem>>, %arg6: memref<32x128xbf16, #tpu.memory_space<vmem>>, %arg7: memref<1x128xf32, #tpu.memory_space<vmem>>, %arg8: memref<128x128xf32, #tpu.memory_space<vmem>>, %arg9: memref<1x8x128xf32, #tpu.memory_space<vmem>>, %arg10: memref<1x8x128xf32, #tpu.memory_space<vmem>>) attributes {dimension_semantics = [#tpu.dimension_semantics<parallel>], iteration_bounds = array<i64: 2>, scalar_prefetch = 0 : i64, scratch_operands = 0 : i64, tpu.core_type = #tpu.core_type<tc>, window_params = [{transform_indices = @transform_0, window_bounds = array<i64: 8, 64, 32>}, {pipeline_mode = #tpu.pipeline_mode<synchronous>, transform_indices = @transform_1, window_bounds = array<i64: 32, 32>}, {pipeline_mode = #tpu.pipeline_mode<synchronous>, transform_indices = @transform_2, window_bounds = array<i64: 1, 32>}, {pipeline_mode = #tpu.pipeline_mode<synchronous>, transform_indices = @transform_3, window_bounds = array<i64: 32, 32>}, {pipeline_mode = #tpu.pipeline_mode<synchronous>, transform_indices = @transform_4, window_bounds = array<i64: 1, 32>}, {pipeline_mode = #tpu.pipeline_mode<synchronous>, transform_indices = @transform_5, window_bounds = array<i64: 32, 128>}, {pipeline_mode = #tpu.pipeline_mode<synchronous>, transform_indices = @transform_6, window_bounds = array<i64: 1, 128>}, {pipeline_mode = #tpu.pipeline_mode<synchronous>, transform_indices = @transform_7, window_bounds = array<i64: 128, 128>}, {transform_indices = @transform_8, window_bounds = array<i64: 1, 8, 128>}, {transform_indices = @transform_9, window_bounds = array<i64: 1, 8, 128>}]} {
    %c0 = arith.constant 0 : index
    %c0_0 = arith.constant 0 : index
    %c0_1 = arith.constant 0 : index
    %0 = vector.load %arg1[%c0, %c0_0, %c0_1] : memref<8x64x32xbf16, #tpu.memory_space<vmem>>, vector<8x64x32xbf16>
    %1 = vector.shape_cast %0 : vector<8x64x32xbf16> to vector<512x32xbf16>
    %c0_2 = arith.constant 0 : index
    %c0_3 = arith.constant 0 : index
    %2 = vector.load %arg2[%c0_2, %c0_3] : memref<32x32xbf16, #tpu.memory_space<vmem>>, vector<32x32xbf16>
    %cst = arith.constant dense<0.000000e+00> : vector<512x32xf32>
    %3 = tpu.matmul %1, %2, %cst {dimension_numbers = #tpu.dot_dimension_numbers<[1], [0], [0], [1], [0, 0, 1, 1], [], []>} : vector<512x32xbf16>, vector<32x32xbf16>, vector<512x32xf32> -> vector<512x32xf32>
    %c0_4 = arith.constant 0 : index
    %c0_5 = arith.constant 0 : index
    %4 = vector.load %arg3[%c0_4, %c0_5] : memref<1x32xf32, #tpu.memory_space<vmem>>, vector<1x32xf32>
    %5 = vector.broadcast %4 : vector<1x32xf32> to vector<512x32xf32>
    %6 = arith.addf %3, %5 : vector<512x32xf32>
    %cst_6 = arith.constant 0.000000e+00 : f32
    %7 = vector.broadcast %cst_6 : f32 to vector<512x32xf32>
    %8 = arith.maximumf %6, %7 : vector<512x32xf32>
    %9 = arith.truncf %8 : vector<512x32xf32> to vector<512x32xbf16>
    %c0_7 = arith.constant 0 : index
    %c0_8 = arith.constant 0 : index
    %10 = vector.load %arg4[%c0_7, %c0_8] : memref<32x32xbf16, #tpu.memory_space<vmem>>, vector<32x32xbf16>
    %cst_9 = arith.constant dense<0.000000e+00> : vector<512x32xf32>
    %11 = tpu.matmul %9, %10, %cst_9 {dimension_numbers = #tpu.dot_dimension_numbers<[1], [0], [0], [1], [0, 0, 1, 1], [], []>} : vector<512x32xbf16>, vector<32x32xbf16>, vector<512x32xf32> -> vector<512x32xf32>
    %c0_10 = arith.constant 0 : index
    %c0_11 = arith.constant 0 : index
    %12 = vector.load %arg5[%c0_10, %c0_11] : memref<1x32xf32, #tpu.memory_space<vmem>>, vector<1x32xf32>
    %13 = vector.broadcast %12 : vector<1x32xf32> to vector<512x32xf32>
    %14 = arith.addf %11, %13 : vector<512x32xf32>
    %15 = arith.negf %14 : vector<512x32xf32>
    %16 = math.exp %15 : vector<512x32xf32>
    %cst_12 = arith.constant 1.000000e+00 : f32
    %17 = vector.broadcast %cst_12 : f32 to vector<512x32xf32>
    %18 = arith.addf %17, %16 : vector<512x32xf32>
    %19 = arith.divf %17, %18 : vector<512x32xf32>
    %20 = arith.mulf %19, %19 : vector<512x32xf32>
    %cst_13 = arith.constant dense<0.000000e+00> : vector<512xf32>
    %21 = vector.multi_reduction <add>, %20, %cst_13 [1] : vector<512x32xf32> to vector<512xf32>
    %22 = vector.shape_cast %21 : vector<512xf32> to vector<512x1xf32>
    %23 = arith.truncf %19 : vector<512x32xf32> to vector<512x32xbf16>
    %c0_14 = arith.constant 0 : index
    %c0_15 = arith.constant 0 : index
    %24 = vector.load %arg6[%c0_14, %c0_15] : memref<32x128xbf16, #tpu.memory_space<vmem>>, vector<32x128xbf16>
    %cst_16 = arith.constant dense<0.000000e+00> : vector<512x128xf32>
    %25 = tpu.matmul %23, %24, %cst_16 {dimension_numbers = #tpu.dot_dimension_numbers<[1], [0], [0], [1], [0, 0, 1, 1], [], []>} : vector<512x32xbf16>, vector<32x128xbf16>, vector<512x128xf32> -> vector<512x128xf32>
    %cst_17 = arith.constant 2.000000e+00 : f32
    %26 = vector.broadcast %cst_17 : f32 to vector<512x128xf32>
    %27 = arith.mulf %26, %25 : vector<512x128xf32>
    %28 = vector.broadcast %22 : vector<512x1xf32> to vector<512x128xf32>
    %29 = arith.subf %28, %27 : vector<512x128xf32>
    %c0_18 = arith.constant 0 : index
    %c0_19 = arith.constant 0 : index
    %30 = vector.load %arg7[%c0_18, %c0_19] : memref<1x128xf32, #tpu.memory_space<vmem>>, vector<1x128xf32>
    %31 = vector.broadcast %30 : vector<1x128xf32> to vector<512x128xf32>
    %32 = arith.addf %29, %31 : vector<512x128xf32>
    %cst_20 = arith.constant 0.000000e+00 : f32
    %33 = vector.broadcast %cst_20 : f32 to vector<512x128xf32>
    %34 = arith.maximumf %32, %33 : vector<512x128xf32>
    %35 = vector.shape_cast %34 : vector<512x128xf32> to vector<8x64x128xf32>
    %cst_21 = arith.constant dense<0x7F800000> : vector<8x128xf32>
    %36 = vector.multi_reduction <minimumf>, %35, %cst_21 [1] : vector<8x64x128xf32> to vector<8x128xf32>
    %cst_22 = arith.constant 1.000000e+00 : f32
    %37 = vector.broadcast %cst_22 : f32 to vector<8x128xf32>
    %38 = arith.addf %36, %37 : vector<8x128xf32>
    %cst_23 = arith.constant 9.99999974E-5 : f32
    %39 = vector.broadcast %cst_23 : f32 to vector<8x128xf32>
    %40 = arith.addf %36, %39 : vector<8x128xf32>
    %41 = arith.divf %38, %40 : vector<8x128xf32>
    %42 = math.log %41 : vector<8x128xf32>
    %c0_24 = arith.constant 0 : index
    %c0_25 = arith.constant 0 : index
    %43 = vector.load %arg8[%c0_24, %c0_25] : memref<128x128xf32, #tpu.memory_space<vmem>>, vector<128x128xf32>
    %cst_26 = arith.constant dense<0.000000e+00> : vector<8x128xf32>
    %44 = tpu.matmul %42, %43, %cst_26 {dimension_numbers = #tpu.dot_dimension_numbers<[1], [0], [0], [1], [0, 0, 1, 1], [], []>} : vector<8x128xf32>, vector<128x128xf32>, vector<8x128xf32> -> vector<8x128xf32>
    %c0_27 = arith.constant 0 : index
    %c0_28 = arith.constant 0 : index
    %c0_29 = arith.constant 0 : index
    %45 = vector.load %arg10[%c0_27, %c0_28, %c0_29] : memref<1x8x128xf32, #tpu.memory_space<vmem>>, vector<1x8x128xf32>
    %46 = vector.shape_cast %45 : vector<1x8x128xf32> to vector<8x128xf32>
    %47 = vector.shape_cast %36 : vector<8x128xf32> to vector<1x8x128xf32>
    tpu.vector_store %arg10[%c0_27, %c0_28, %c0_29], %47 {strides = array<i32>} : memref<1x8x128xf32, #tpu.memory_space<vmem>>, vector<1x8x128xf32>,
    %c0_30 = arith.constant 0 : index
    %c0_31 = arith.constant 0 : index
    %c0_32 = arith.constant 0 : index
    %48 = vector.load %arg9[%c0_30, %c0_31, %c0_32] : memref<1x8x128xf32, #tpu.memory_space<vmem>>, vector<1x8x128xf32>
    %49 = vector.shape_cast %48 : vector<1x8x128xf32> to vector<8x128xf32>
    %50 = vector.shape_cast %44 : vector<8x128xf32> to vector<1x8x128xf32>
    tpu.vector_store %arg9[%c0_30, %c0_31, %c0_32], %50 {strides = array<i32>} : memref<1x8x128xf32, #tpu.memory_space<vmem>>, vector<1x8x128xf32>,
    return
  }
  func.func @transform_0(%arg0: i32) -> (i32, i32, i32) {
    %c0_i32 = arith.constant 0 : i32
    %c0_i32_0 = arith.constant 0 : i32
    %c0_i32_1 = arith.constant 0 : i32
    return %arg0, %c0_i32, %c0_i32_0 : i32, i32, i32
  }
  func.func @transform_1(%arg0: i32) -> (i32, i32) {
    %c0_i32 = arith.constant 0 : i32
    %c0_i32_0 = arith.constant 0 : i32
    %c0_i32_1 = arith.constant 0 : i32
    return %c0_i32, %c0_i32_0 : i32, i32
  }
  func.func @transform_2(%arg0: i32) -> (i32, i32) {
    %c0_i32 = arith.constant 0 : i32
    %c0_i32_0 = arith.constant 0 : i32
    %c0_i32_1 = arith.constant 0 : i32
    return %c0_i32, %c0_i32_0 : i32, i32
  }
  func.func @transform_3(%arg0: i32) -> (i32, i32) {
    %c0_i32 = arith.constant 0 : i32
    %c0_i32_0 = arith.constant 0 : i32
    %c0_i32_1 = arith.constant 0 : i32
    return %c0_i32, %c0_i32_0 : i32, i32
  }
  func.func @transform_4(%arg0: i32) -> (i32, i32) {
    %c0_i32 = arith.constant 0 : i32
    %c0_i32_0 = arith.constant 0 : i32
    %c0_i32_1 = arith.constant 0 : i32
    return %c0_i32, %c0_i32_0 : i32, i32
  }
  func.func @transform_5(%arg0: i32) -> (i32, i32) {
    %c0_i32 = arith.constant 0 : i32
    %c0_i32_0 = arith.constant 0 : i32
    %c0_i32_1 = arith.constant 0 : i32
    return %c0_i32, %c0_i32_0 : i32, i32
  }
  func.func @transform_6(%arg0: i32) -> (i32, i32) {
    %c0_i32 = arith.constant 0 : i32
    %c0_i32_0 = arith.constant 0 : i32
    %c0_i32_1 = arith.constant 0 : i32
    return %c0_i32, %c0_i32_0 : i32, i32
  }
  func.func @transform_7(%arg0: i32) -> (i32, i32) {
    %c0_i32 = arith.constant 0 : i32
    %c0_i32_0 = arith.constant 0 : i32
    %c0_i32_1 = arith.constant 0 : i32
    return %c0_i32, %c0_i32_0 : i32, i32
  }
  func.func @transform_8(%arg0: i32) -> (i32, i32, i32) {
    %c0_i32 = arith.constant 0 : i32
    %c0_i32_0 = arith.constant 0 : i32
    %c0_i32_1 = arith.constant 0 : i32
    return %arg0, %c0_i32, %c0_i32_0 : i32, i32, i32
  }
  func.func @transform_9(%arg0: i32) -> (i32, i32, i32) {
    %c0_i32 = arith.constant 0 : i32
    %c0_i32_0 = arith.constant 0 : i32
    %c0_i32_1 = arith.constant 0 : i32
    return %arg0, %c0_i32, %c0_i32_0 : i32, i32, i32
  }
}

</mosaic_0001>

<bundles_post_ra>
// kernel: ppnet_forward.1
= control target key start
LH: loop header
LB: loop body
LE: loop exit
PB: predicated region body
PF: predicated region fallthrough
CT: control target
= control target key end

     0   :  { %s5223_s0 = inlined_call_operand.vmem [shape: bf16[16,64,32], index: 0, kind: input, shape index: {}]   ;;  %s5224_s1 = inlined_call_operand.vmem [shape: bf16[32,32], index: 1, kind: input, shape index: {}]   ;;  %s5225_s2 = inlined_call_operand.vmem [shape: f32[1,32], index: 2, kind: input, shape index: {}]   ;;  %s5226_s3 = inlined_call_operand.vmem [shape: bf16[32,32], index: 3, kind: input, shape index: {}]   ;;  %s5227_s4 = inlined_call_operand.vmem [shape: f32[1,32], index: 4, kind: input, shape index: {}]   ;;  %s5228_s5 = inlined_call_operand.vmem [shape: bf16[32,128], index: 5, kind: input, shape index: {}]   ;;  %s5229_s6 = inlined_call_operand.vmem [shape: f32[1,128], index: 6, kind: input, shape index: {}]   ;;  %s5230_s7 = inlined_call_operand.vmem [shape: f32[128,128], index: 7, kind: input, shape index: {}]   ;;  %s5231_s8 = inlined_call_operand.vmem [shape: f32[2,8,128], index: 8, kind: output, shape index: {0}]   ;;  %s5232_s9 = inlined_call_operand.hbm [shape: f32[2,8,128], index: 9, kind: output, shape index: {1}]  }
   0x1   :  { %5233 = sst [smem:[#allocation5_spill]] %s5223_s0 }
   0x2   :  { %15 = vsyncpa [#allocation3], 0 }
   0x3   :  { %17 = vsyncpa [#allocation3 + $0x1], 0  ;;  %s4264_s30 = smov 0   ;;  %s4266_s10 = smov 0  }
   0x4   :  { %s4268_s11 = smov 0   ;;  %s4270_s12 = smov 0  }
   0x5 LB: > { %s4285_s13 = sadd.s32 4294967295, %s4209_s12   ;;  %s3204_s14 = sadd.s32 4294967294, %s4209_s12   ;;  %s4209_s12 = sphi %s4270_s12, %s5240_s12   ;;  %s4205_s11 = sphi %s4268_s11, %s5239_s11   ;;  %s4201_s10 = sphi %s4266_s10, %s5238_s10   ;;  %s4197_s30 = sphi %s4264_s30, %s5237_s30  }
   0x6   : > { %s4289_s15 = sadd.s32 1, %s4209_s12   ;;  %s229_s16 = sadd.s32 1, %s4205_s11 }
   0x7   : > { %s226_s17 = ssub.s32 %s4209_s12, %s4289_s15  ;;  %p239_p0 = scmp.ne.s32.totalorder %s4205_s11, %s4201_s10 }
   0x8   : > { %p227_p1 = scmp.eq.s32.totalorder %s226_s17, 0  ;;  %p240_p2 = scmp.eq.s32.totalorder %s4285_s13, 1 }
   0x9   : > { %p245_p3 = scmp.ne.s32.totalorder %s4201_s10, %s4197_s30  ;;  %p246_p4 = scmp.eq.s32.totalorder %s3204_s14, 1 }
   0xa   : > { %s4300_s18 = scalar_select %p227_p1, %s4205_s11, %s229_s16  }
   0xb   : > { %p4302_p5 = por %p240_p2, %p239_p0  ;;  %p4306_p6 = por %p246_p4, %p245_p3 }
   0xc   : > { %p3207_p7 = scmp.ge.s32.totalorder %s4209_s12, 1  ;;  %p295_p8 = scmp.lt.s32.totalorder %s4209_s12, 3 }
   0xe   : > { %p296_p9 = pnand %p3207_p7, %p295_p8 }
   0xf   : > { %s3209_s23 = sshll.u32 (!%p296_p9), %s4285_s13, 3  ;;  %s5236_s0 = sld [smem:[#allocation5_spill]] (!%p296_p9) }
  0x10   : > { %299 = sbr.rel (%p296_p9) target bundleno = 1048 (0x418), region = 52  ;;  %p337_p10 = scmp.lt.s32.totalorder (!%p296_p9), %s3209_s23, 15 }
  0x11   : > { %s333_s14 = sand.u32 (!%p296_p9), 1, %s4201_s10   ;;  %s3415_s21 = sshll.u32 (!%p296_p9), %s4285_s13, 7 }
  0x12   : > { %s3119_s24 = scalar_lea.hbm (!%p296_p9), %s5232_s9, %s3415_s21  ;;  %s3105_s26 = scalar_lea.sflag (!%p296_p9), [#allocation3], %s333_s14 }
  0x15   : > { %v3822_v0 = vld [vmem:[%s5224_s1 + $0x8] sm:$0xff]   ;;  %v3823_v1 = vld [vmem:[%s5224_s1] sm:$0xff]   ;;  %s5242_s23 = smov (!%p337_p10, %s3209_s23), 15  ;;  %vm595_vm0 = vcmask 261120   ;;  %vm4212_vm1 = vmmov 0   ;;  %vm2997_vm2 = vcmask 1041409  }
  0x16   : > { %3538 = vmatprep.subr.bf16.mxu0 %v3822_v0  ;;  %3777 = vmatprep.subr.bf16.mxu1 %v3822_v0  ;;  %v3856_v2 = vld [vmem:[%s5226_s3 + $0x8] sm:$0xff]   ;;  %s3418_s28 = sshll.u32 %s5242_s23, 5  ;;  %v3857_v10 = vld [vmem:[%s5226_s3] sm:$0xff]   ;;  %vm2999_vm3 = vcmask 1042434   ;;  %vm3001_vm4 = vcmask 1043459   ;;  %vm3003_vm5 = vcmask 1044484  }
  0x17   : > { %3539 = vmatpush3.bf16.msra.mxu0 %v3822_v0  ;;  %3779 = vmatpush3.bf16.msra.mxu1 %v3822_v0  ;;  %s4325_s16 = scalar_lea.vmem %s5236_s0, %s3418_s28  ;;  %v4397_v38 = vld [vmem:[%s5225_s2] ss:$0 sm:$0xff]  ;;  %v3858_v44 = vld [vmem:[%s5228_s5 + $0x8] sm:$0xff]   ;;  %vm3005_vm6 = vcmask 1045509   ;;  %vm3007_vm7 = vcmask 1046534   ;;  %vm3009_vm8 = vcmask 1047559  }
  0x18   : > { %3540 = vmatprep.subr.bf16.mxu0 %v3823_v1  ;;  %3778 = vmatprep.subr.bf16.mxu1 %v3823_v1  ;;  %v3824_v3 = vld [vmem:[%s4325_s16] sm:$0xff]   ;;  %v3825_v4 = vld [vmem:[%s4325_s16 + $0x8] sm:$0xff]   ;;  %v3826_v5 = vld [vmem:[%s4325_s16 + $0x10] sm:$0xff]   ;;  %s4213_s28 = smov [#allocation2]  }
  0x19   : > { %3542 = vmatprep.mubr.msk.bf16.mxu0 %vm595_vm0, %v3824_v3  ;;  %v3827_v6 = vld [vmem:[%s4325_s16 + $0x18] sm:$0xff]   ;;  %v3828_v7 = vld [vmem:[%s4325_s16 + $0x20] sm:$0xff]   ;;  %v3829_v8 = vld [vmem:[%s4325_s16 + $0x28] sm:$0xff]   ;;  %s4153_s29 = sshll.u32 %s4213_s28, 4  ;;  %s4154_s29 = int_to_ptr.vmem [resolvable:$false] %s4153_s29 }
  0x1a   : > { %v3830_v9 = vld [vmem:[%s4325_s16 + $0x30] sm:$0xff]   ;;  %v3843_v12 = vld [vmem:[%s4325_s16 + $0x98] sm:$0xff]   ;;  %v3844_v13 = vld [vmem:[%s4325_s16 + $0xa0] sm:$0xff]   ;;  %s4155_s0 = scalar_lea.vmem %s4154_s29, 256 }
  0x1b   : > { %3541 = vmatpush3.bf16.msra.mxu0 %v3823_v1  ;;  %3780 = vmatpush3.bf16.msra.mxu1 %v3823_v1  ;;  %v3842_v11 = vld [vmem:[%s4325_s16 + $0x90] sm:$0xff]   ;;  %v3831_v14 = vld [vmem:[%s4325_s16 + $0x38] sm:$0xff]   ;;  %v3832_v15 = vld [vmem:[%s4325_s16 + $0x40] sm:$0xff]  }
  0x1c   : > { %3606 = vmatprep.subr.bf16.mxu1 %v3856_v2  ;;  %3578 = vmatprep.mubr.msk.bf16.mxu1 %vm595_vm0, %v3842_v11  ;;  %v3845_v16 = vld [vmem:[%s4325_s16 + $0xa8] sm:$0xff]   ;;  %v3846_v17 = vld [vmem:[%s4325_s16 + $0xb0] sm:$0xff]   ;;  %v3847_v20 = vld [vmem:[%s4325_s16 + $0xb8] sm:$0xff]  }
  0x1d   : > { %v3833_v18 = vld [vmem:[%s4325_s16 + $0x48] sm:$0xff]   ;;  %v3834_v19 = vld [vmem:[%s4325_s16 + $0x50] sm:$0xff]   ;;  %v3848_v21 = vld [vmem:[%s4325_s16 + $0xc0] sm:$0xff]   ;;  %3674 = vmatprep.subr.bf16.mxu0 %v3858_v44 }
  0x1e   : > { %3543 = vmatmul.mubr.msk.bf16.vlgmr.msra.gmra.mxu0 %vm595_vm0, %v3825_v4  ;;  %3579 = vmatmul.mubr.msk.bf16.vlgmr.msra.gmra.mxu1 %vm595_vm0, %v3843_v12  ;;  %v3835_v22 = vld [vmem:[%s4325_s16 + $0x58] sm:$0xff]   ;;  %v3836_v23 = vld [vmem:[%s4325_s16 + $0x60] sm:$0xff]   ;;  %v3849_v24 = vld [vmem:[%s4325_s16 + $0xc8] sm:$0xff]  }
  0x1f   : > { %3546 = vmatprep.mubr.msk.bf16.mxu0 %vm595_vm0, %v3826_v5  ;;  %3582 = vmatprep.mubr.msk.bf16.mxu1 %vm595_vm0, %v3844_v13  ;;  %v3850_v25 = vld [vmem:[%s4325_s16 + $0xd0] sm:$0xff]   ;;  %v3837_v26 = vld [vmem:[%s4325_s16 + $0x68] sm:$0xff]   ;;  %v3851_v28 = vld [vmem:[%s4325_s16 + $0xd8] sm:$0xff]  }
  0x20   : > { %3607 = vmatpush3.bf16.msra.mxu1 %v3856_v2  ;;  %v3838_v27 = vld [vmem:[%s4325_s16 + $0x70] sm:$0xff]   ;;  %v3852_v29 = vld [vmem:[%s4325_s16 + $0xe0] sm:$0xff]   ;;  %v3839_v30 = vld [vmem:[%s4325_s16 + $0x78] sm:$0xff]   ;;  %3675 = vmatpush3.bf16.msra.mxu0 %v3858_v44 }
  0x21   : > { %3608 = vmatprep.subr.bf16.mxu1 %v3857_v10  ;;  %v3840_v31 = vld [vmem:[%s4325_s16 + $0x80] sm:$0xff]   ;;  %v3853_v32 = vld [vmem:[%s4325_s16 + $0xe8] sm:$0xff]   ;;  %v3854_v33 = vld [vmem:[%s4325_s16 + $0xf0] sm:$0xff]  }
  0x22   : > { %v3841_v34 = vld [vmem:[%s4325_s16 + $0x88] sm:$0xff]   ;;  %v3855_v35 = vld [vmem:[%s4325_s16 + $0xf8] sm:$0xff]   ;;  %s5166_s16 = sshll.u32 %s333_s14, 3 }
  0x23   : > { %s335_s17 = scalar_lea.vmem [#allocation2], %s5166_s16 }
  0x24   : > { %3609 = vmatpush3.bf16.msra.mxu1 %v3857_v10  ;;  %s3121_s25 = sshll.u32 %s335_s17, 4  ;;  %s3122_s25 = int_to_ptr.vmem [resolvable:$true] %s3121_s25 }
  0x25   : > { %s4149_s27 = scalar_lea.vmem %s3122_s25, 128  ;;  %p4156_p0 = scmp.lt.s32.totalorder %s3122_s25, %s4154_s29 }
  0x26   : > { %3547 = vmatmul.mubr.msk.bf16.gmra.mxu0 %vm595_vm0, %v3827_v6  ;;  %3583 = vmatmul.mubr.msk.bf16.gmra.mxu1 %vm595_vm0, %v3845_v16  ;;  %p4150_p11 = scmp.ne.s32.totalorder %s3122_s25, %s4149_s27  ;;  %p4157_p1 = scmp.lt.s32.totalorder %s4155_s0, %s4149_s27 }
  0x27   : > { %3550 = vmatprep.mubr.msk.bf16.mxu0 %vm595_vm0, %v3828_v7  ;;  %3586 = vmatprep.mubr.msk.bf16.mxu1 %vm595_vm0, %v3846_v17 }
  0x28   : > { %p4151_p12 = pnand %p4150_p11, %p4302_p5  ;;  %p4158_p2 = por %p4157_p1, %p4156_p0 }
  0x2a   : > { %p4152_p13 = pneg %p4151_p12 }
  0x2c   : > { %p4159_p3 = pnand %p4158_p2, %p4152_p13 }
  0x2e   : > { %3551 = vmatmul.mubr.msk.bf16.gmra.mxu0 %vm595_vm0, %v3829_v8  ;;  %3587 = vmatmul.mubr.msk.bf16.gmra.mxu1 %vm595_vm0, %v3847_v20 }
  0x2f   : > { %3554 = vmatprep.mubr.msk.bf16.mxu0 %vm595_vm0, %v3830_v9  ;;  %3590 = vmatprep.mubr.msk.bf16.mxu1 %vm595_vm0, %v3848_v21 }
  0x36   : > { %3555 = vmatmul.mubr.msk.bf16.gmra.mxu0 %vm595_vm0, %v3831_v14  ;;  %3591 = vmatmul.mubr.msk.bf16.gmra.mxu1 %vm595_vm0, %v3849_v24 }
  0x37   : > { %3558 = vmatprep.mubr.msk.bf16.mxu0 %vm595_vm0, %v3832_v15  ;;  %3594 = vmatprep.mubr.msk.bf16.mxu1 %vm595_vm0, %v3850_v25 }
  0x3e   : > { %3559 = vmatmul.mubr.msk.bf16.gmra.mxu0 %vm595_vm0, %v3833_v18  ;;  %3595 = vmatmul.mubr.msk.bf16.gmra.mxu1 %vm595_vm0, %v3851_v28 }
  0x3f   : > { %3562 = vmatprep.mubr.msk.bf16.mxu0 %vm595_vm0, %v3834_v19  ;;  %3598 = vmatprep.mubr.msk.bf16.mxu1 %vm595_vm0, %v3852_v29 }
  0x46   : > { %3563 = vmatmul.mubr.msk.bf16.gmra.mxu0 %vm595_vm0, %v3835_v22  ;;  %3599 = vmatmul.mubr.msk.bf16.gmra.mxu1 %vm595_vm0, %v3853_v32 }
  0x47   : > { %3566 = vmatprep.mubr.msk.bf16.mxu0 %vm595_vm0, %v3836_v23  ;;  %3602 = vmatprep.mubr.msk.bf16.mxu1 %vm595_vm0, %v3854_v33 }
  0x4e   : > { %3567 = vmatmul.mubr.msk.bf16.gmra.mxu0 %vm595_vm0, %v3837_v26  ;;  %3603 = vmatmul.mubr.msk.bf16.gmra.mxu1 %vm595_vm0, %v3855_v35 }
  0x4f   : > { %3570 = vmatprep.mubr.msk.bf16.mxu0 %vm595_vm0, %v3838_v27 }
  0x56   : > { %3571 = vmatmul.mubr.msk.bf16.gmra.mxu0 %vm595_vm0, %v3839_v30 }
  0x57   : > { %3574 = vmatprep.mubr.msk.bf16.mxu0 %vm595_vm0, %v3840_v31 }
  0x5e   : > { %3575 = vmatmul.mubr.msk.bf16.gmra.mxu0 %vm595_vm0, %v3841_v34 }
  0xde   : > { %v3544_v36 = vpop.f32.mrf.mxu0  ;;  %v4412_v2 = vpop.f32.mrf.mxu1 }
  0xdf   : > { %v735_v42 = vadd.f32 %v3544_v36, %v4397_v38 }
  0xe0   : > { %v726_v37 = vpop.f32.mrf.mxu0  ;;  %v4414_v6 = vpop.f32.mrf.mxu1 }
  0xe1   : > { %v727_v40 = vadd.f32 %v4397_v38, %v726_v37  ;;  %v983_v50 = vmax.f32 %v735_v42, 0.0 }
  0xe2   : > { %v3545_v39 = vpop.f32.mrf.mxu0  ;;  %v4421_v11 = vpop.f32.mrf.mxu1 }
  0xe3   : > { %v738_v41 = vadd.f32 %v3545_v39, %v4397_v38  ;;  %v981_v48 = vmax.f32 %v727_v40, 0.0 }
  0xe4   : > { %v729_v43 = vpop.f32.mrf.mxu0  ;;  %v4424_v15 = vpop.f32.mrf.mxu1 }
  0xe5   : > { %v730_v45 = vadd.f32 %v4397_v38, %v729_v43  ;;  %v984_v46 = vmax.f32 %v738_v41, 0.0 }
  0xe6   : > { %v3548_v47 = vpop.f32.mrf.mxu0  ;;  %v4426_v20 = vpop.f32.mrf.mxu1 }
  0xe7   : > { %v982_v49 = vmax.f32 %v730_v45, 0.0  ;;  %v1046_v53 = vpack.c.bf16 %v984_v46, %v983_v50  ;;  %v751_v57 = vadd.f32 %v3548_v47, %v4397_v38 }
  0xe8   : > { %v742_v51 = vpop.f32.mrf.mxu0  ;;  %v4428_v24 = vpop.f32.mrf.mxu1 }
  0xe9   : > { %v1045_v52 = vpack.c.bf16 %v982_v49, %v981_v48  ;;  %v743_v55 = vadd.f32 %v4397_v38, %v742_v51  ;;  %v987_v0 = vmax.f32 %v751_v57, 0.0 }
  0xea   : > { %v3549_v54 = vpop.f32.mrf.mxu0  ;;  %v4435_v29 = vpop.f32.mrf.mxu1 }
  0xeb   : > { %v754_v56 = vadd.f32 %v3549_v54, %v4397_v38  ;;  %3610 = vmatprep.mubr.msk.bf16.mxu1 %vm595_vm0, %v1045_v52  ;;  %v985_v62 = vmax.f32 %v743_v55, 0.0 }
  0xec   : > { %v745_v58 = vpop.f32.mrf.mxu0  ;;  %3611 = vmatmul.mubr.msk.bf16.vlgmr.msra.gmra.mxu1 %vm595_vm0, %v1046_v53  ;;  %v4438_v33 = vpop.f32.mrf.mxu1 }
  0xed   : > { %v746_v59 = vadd.f32 %v4397_v38, %v745_v58  ;;  %v988_v60 = vmax.f32 %v754_v56, 0.0 }
  0xee   : > { %v3552_v61 = vpop.f32.mrf.mxu0  ;;  %v4440_v42 = vpop.f32.mrf.mxu1 }
  0xef   : > { %v986_v63 = vmax.f32 %v746_v59, 0.0  ;;  %v1048_v4 = vpack.c.bf16 %v988_v60, %v987_v0  ;;  %v767_v9 = vadd.f32 %v3552_v61, %v4397_v38 }
  0xf0   : > { %v758_v1 = vpop.f32.mrf.mxu0  ;;  %v4448_v50 = vpop.f32.mrf.mxu1 }
  0xf1   : > { %v1047_v3 = vpack.c.bf16 %v986_v63, %v985_v62  ;;  %v759_v7 = vadd.f32 %v4397_v38, %v758_v1  ;;  %v991_v18 = vmax.f32 %v767_v9, 0.0 }
  0xf2   : > { %v3553_v5 = vpop.f32.mrf.mxu0  ;;  %v4450_v58 = vpop.f32.mrf.mxu1 }
  0xf3   : > { %v770_v8 = vadd.f32 %v3553_v5, %v4397_v38  ;;  %3614 = vmatprep.mubr.msk.bf16.mxu1 %vm595_vm0, %v1047_v3  ;;  %v989_v16 = vmax.f32 %v759_v7, 0.0 }
  0xf4   : > { %v761_v10 = vpop.f32.mrf.mxu0  ;;  %3615 = vmatmul.mubr.msk.bf16.gmra.mxu1 %vm595_vm0, %v1048_v4  ;;  %v4458_v3 = vpop.f32.mrf.mxu1 }
  0xf5   : > { %v762_v12 = vadd.f32 %v4397_v38, %v761_v10  ;;  %v992_v13 = vmax.f32 %v770_v8, 0.0 }
  0xf6   : > { %v3556_v14 = vpop.f32.mrf.mxu0 }
  0xf7   : > { %v990_v17 = vmax.f32 %v762_v12, 0.0  ;;  %v1050_v22 = vpack.c.bf16 %v992_v13, %v991_v18  ;;  %v783_v27 = vadd.f32 %v3556_v14, %v4397_v38  ;;  %v4460_v13 = vpop.f32.mrf.mxu1 }
  0xf8   : > { %v774_v19 = vpop.f32.mrf.mxu0 }
  0xf9   : > { %v1049_v21 = vpack.c.bf16 %v990_v17, %v989_v16  ;;  %v775_v25 = vadd.f32 %v4397_v38, %v774_v19  ;;  %v995_v36 = vmax.f32 %v783_v27, 0.0 }
  0xfa   : > { %v3557_v23 = vpop.f32.mrf.mxu0 }
  0xfb   : > { %v786_v26 = vadd.f32 %v3557_v23, %v4397_v38  ;;  %3618 = vmatprep.mubr.msk.bf16.mxu1 %vm595_vm0, %v1049_v21  ;;  %v993_v34 = vmax.f32 %v775_v25, 0.0  ;;  %v4468_v23 = vpop.f32.mrf.mxu1 }
  0xfc   : > { %v777_v28 = vpop.f32.mrf.mxu0  ;;  %3619 = vmatmul.mubr.msk.bf16.gmra.mxu1 %vm595_vm0, %v1050_v22 }
  0xfd   : > { %v778_v30 = vadd.f32 %v4397_v38, %v777_v28  ;;  %v996_v31 = vmax.f32 %v786_v26, 0.0 }
  0xfe   : > { %v3560_v32 = vpop.f32.mrf.mxu0 }
  0xff   : > { %v994_v35 = vmax.f32 %v778_v30, 0.0  ;;  %v1052_v40 = vpack.c.bf16 %v996_v31, %v995_v36  ;;  %v799_v45 = vadd.f32 %v3560_v32, %v4397_v38 }
 0x100   : > { %v790_v37 = vpop.f32.mrf.mxu0 }
 0x101   : > { %v1051_v39 = vpack.c.bf16 %v994_v35, %v993_v34  ;;  %v791_v43 = vadd.f32 %v4397_v38, %v790_v37  ;;  %v999_v53 = vmax.f32 %v799_v45, 0.0  ;;  %v4470_v34 = vpop.f32.mrf.mxu1 }
 0x102   : > { %v3561_v41 = vpop.f32.mrf.mxu0 }
 0x103   : > { %v802_v44 = vadd.f32 %v3561_v41, %v4397_v38  ;;  %3622 = vmatprep.mubr.msk.bf16.mxu1 %vm595_vm0, %v1051_v39  ;;  %v997_v51 = vmax.f32 %v791_v43, 0.0 }
 0x104   : > { %v793_v46 = vpop.f32.mrf.mxu0  ;;  %3623 = vmatmul.mubr.msk.bf16.gmra.mxu1 %vm595_vm0, %v1052_v40 }
 0x105   : > { %v794_v47 = vadd.f32 %v4397_v38, %v793_v46  ;;  %v1000_v48 = vmax.f32 %v802_v44, 0.0  ;;  %v921_v44 = vpop.f32.mrf.mxu1 }
 0x106   : > { %v3564_v49 = vpop.f32.mrf.mxu0 }
 0x107   : > { %v998_v52 = vmax.f32 %v794_v47, 0.0  ;;  %v1054_v56 = vpack.c.bf16 %v1000_v48, %v999_v53  ;;  %v815_v61 = vadd.f32 %v3564_v49, %v4397_v38 }
 0x108   : > { %v806_v54 = vpop.f32.mrf.mxu0 }
 0x109   : > { %v1053_v55 = vpack.c.bf16 %v998_v52, %v997_v51  ;;  %v807_v59 = vadd.f32 %v4397_v38, %v806_v54  ;;  %v1003_v7 = vmax.f32 %v815_v61, 0.0  ;;  %v871_v51 = vadd.f32 %v4397_v38, %v4414_v6 }
 0x10a   : > { %v3565_v57 = vpop.f32.mrf.mxu0  ;;  %v874_v52 = vadd.f32 %v4397_v38, %v4424_v15 }
 0x10b   : > { %v818_v60 = vadd.f32 %v3565_v57, %v4397_v38  ;;  %3626 = vmatprep.mubr.msk.bf16.mxu1 %vm595_vm0, %v1053_v55  ;;  %v1001_v4 = vmax.f32 %v807_v59, 0.0  ;;  %v4482_v55 = vpop.f32.mrf.mxu1  ;;  %v1017_v61 = vmax.f32 %v871_v51, 0.0 }
 0x10c   : > { %v809_v62 = vpop.f32.mrf.mxu0  ;;  %3627 = vmatmul.mubr.msk.bf16.gmra.mxu1 %vm595_vm0, %v1054_v56 }
 0x10d   : > { %v810_v63 = vadd.f32 %v4397_v38, %v809_v62  ;;  %v1004_v0 = vmax.f32 %v818_v60, 0.0  ;;  %v1018_v62 = vmax.f32 %v874_v52, 0.0 }
 0x10e   : > { %v3568_v1 = vpop.f32.mrf.mxu0 }
 0x10f   : > { %v1002_v5 = vmax.f32 %v810_v63, 0.0  ;;  %v1056_v10 = vpack.c.bf16 %v1004_v0, %v1003_v7  ;;  %v831_v17 = vadd.f32 %v3568_v1, %v4397_v38  ;;  %v934_v63 = vpop.f32.mrf.mxu1  ;;  %v1063_v7 = vpack.c.bf16 %v1018_v62, %v1017_v61 }
 0x110   : > { %v822_v8 = vpop.f32.mrf.mxu0  ;;  %v943_v61 = vadd.f32 %v4482_v55, %v4397_v38 }
 0x111   : > { %v1055_v9 = vpack.c.bf16 %v1002_v5, %v1001_v4  ;;  %v823_v14 = vadd.f32 %v4397_v38, %v822_v8  ;;  %v1007_v27 = vmax.f32 %v831_v17, 0.0  ;;  %v887_v8 = vadd.f32 %v4397_v38, %v4428_v24 }
 0x112   : > { %v3569_v12 = vpop.f32.mrf.mxu0 }
 0x113   : > { %v834_v16 = vadd.f32 %v3569_v12, %v4397_v38  ;;  %3630 = vmatprep.mubr.msk.bf16.mxu1 %vm595_vm0, %v1055_v9  ;;  %v1005_v25 = vmax.f32 %v823_v14, 0.0  ;;  %v890_v9 = vadd.f32 %v4397_v38, %v4438_v33  ;;  %v882_v14 = vadd.f32 %v4421_v11, %v4397_v38 }
 0x114   : > { %v825_v18 = vpop.f32.mrf.mxu0  ;;  %3631 = vmatmul.mubr.msk.bf16.gmra.mxu1 %vm595_vm0, %v1056_v10  ;;  %v879_v10 = vadd.f32 %v4412_v2, %v4397_v38  ;;  %v1021_v17 = vmax.f32 %v887_v8, 0.0  ;;  %v903_v2 = vadd.f32 %v4397_v38, %v4448_v50 }
 0x115   : > { %v826_v19 = vadd.f32 %v4397_v38, %v825_v18  ;;  %v1008_v21 = vmax.f32 %v834_v16, 0.0  ;;  %v3597_v16 = vpop.f32.mrf.mxu1  ;;  %v1022_v18 = vmax.f32 %v890_v9, 0.0 }
 0x116   : > { %v3572_v22 = vpop.f32.mrf.mxu0  ;;  %v1019_v24 = vmax.f32 %v879_v10, 0.0 }
 0x117   : > { %v1006_v26 = vmax.f32 %v826_v19, 0.0  ;;  %v1058_v31 = vpack.c.bf16 %v1008_v21, %v1007_v27  ;;  %v847_v37 = vadd.f32 %v3572_v22, %v4397_v38  ;;  %v1020_v19 = vmax.f32 %v882_v14, 0.0  ;;  %v937_v21 = vpop.f32.mrf.mxu1 }
 0x118   : > { %v838_v28 = vpop.f32.mrf.mxu0  ;;  %v1065_v33 = vpack.c.bf16 %v1022_v18, %v1021_v17  ;;  %v906_v22 = vadd.f32 %v4397_v38, %v4458_v3  ;;  %v919_v3 = vadd.f32 %v4397_v38, %v4468_v23 }
 0x119   : > { %v1057_v30 = vpack.c.bf16 %v1006_v26, %v1005_v25  ;;  %v839_v35 = vadd.f32 %v4397_v38, %v838_v28  ;;  %v1011_v47 = vmax.f32 %v847_v37, 0.0  ;;  %v1064_v11 = vpack.c.bf16 %v1020_v19, %v1019_v24  ;;  %v3600_v27 = vpop.f32.mrf.mxu1 }
 0x11a   : > { %v3573_v32 = vpop.f32.mrf.mxu0  ;;  %v895_v25 = vadd.f32 %v4426_v20, %v4397_v38  ;;  %v898_v26 = vadd.f32 %v4435_v29, %v4397_v38  ;;  %v1025_v28 = vmax.f32 %v903_v2, 0.0  ;;  %v911_v29 = vadd.f32 %v4440_v42, %v4397_v38 }
 0x11b   : > { %v850_v36 = vadd.f32 %v3573_v32, %v4397_v38  ;;  %3634 = vmatprep.mubr.msk.bf16.mxu1 %vm595_vm0, %v1057_v30  ;;  %v1009_v45 = vmax.f32 %v839_v35, 0.0  ;;  %v1026_v30 = vmax.f32 %v906_v22, 0.0  ;;  %v950_v50 = vpop.f32.mrf.mxu1  ;;  %v914_v37 = vadd.f32 %v4450_v58, %v4397_v38 }
 0x11c   : > { %v841_v39 = vpop.f32.mrf.mxu0  ;;  %3635 = vmatmul.mubr.msk.bf16.gmra.mxu1 %vm595_vm0, %v1058_v31  ;;  %v1023_v31 = vmax.f32 %v895_v25, 0.0  ;;  %v1024_v32 = vmax.f32 %v898_v26, 0.0  ;;  %v927_v42 = vadd.f32 %v4460_v13, %v4397_v38  ;;  %v930_v58 = vadd.f32 %v4470_v34, %v4397_v38 }
 0x11d   : > { %v842_v40 = vadd.f32 %v4397_v38, %v841_v39  ;;  %v1012_v41 = vmax.f32 %v850_v36, 0.0  ;;  %v1067_v35 = vpack.c.bf16 %v1026_v30, %v1025_v28  ;;  %v922_v36 = vadd.f32 %v4397_v38, %v921_v44  ;;  %v3601_v39 = vpop.f32.mrf.mxu1 }
 0x11e   : > { %v3576_v43 = vpop.f32.mrf.mxu0  ;;  %v1066_v20 = vpack.c.bf16 %v1024_v32, %v1023_v31  ;;  %v935_v44 = vadd.f32 %v4397_v38, %v934_v63  ;;  %v951_v13 = vadd.f32 %v4397_v38, %v950_v50  ;;  %v959_v55 = vadd.f32 %v3600_v27, %v4397_v38 }
 0x11f   : > { %v1010_v46 = vmax.f32 %v842_v40, 0.0  ;;  %v1060_v53 = vpack.c.bf16 %v1012_v41, %v1011_v47  ;;  %v863_v59 = vadd.f32 %v3576_v43, %v4397_v38  ;;  %v1029_v40 = vmax.f32 %v919_v3, 0.0 }
 0x120   : > { %v854_v48 = vpop.f32.mrf.mxu0  ;;  %v1030_v41 = vmax.f32 %v922_v36, 0.0  ;;  %v1027_v43 = vmax.f32 %v911_v29, 0.0  ;;  %v938_v47 = vadd.f32 %v4397_v38, %v937_v21  ;;  %v1033_v51 = vmax.f32 %v935_v44, 0.0 }
 0x121   : > { %v1059_v49 = vpack.c.bf16 %v1010_v46, %v1009_v45  ;;  %v855_v56 = vadd.f32 %v4397_v38, %v854_v48  ;;  %v1015_v4 = vmax.f32 %v863_v59, 0.0  ;;  %v1028_v45 = vmax.f32 %v914_v37, 0.0  ;;  %v953_v46 = vpop.f32.mrf.mxu1 }
 0x122   : > { %v3577_v54 = vpop.f32.mrf.mxu0  ;;  %v1069_v23 = vpack.c.bf16 %v1030_v41, %v1029_v40  ;;  %v1034_v52 = vmax.f32 %v938_v47, 0.0  ;;  %v962_v10 = vadd.f32 %v3601_v39, %v4397_v38 }
 0x123   : > { %v866_v57 = vadd.f32 %v3577_v54, %v4397_v38  ;;  %3638 = vmatprep.mubr.msk.bf16.mxu1 %vm595_vm0, %v1059_v49  ;;  %v1013_v0 = vmax.f32 %v855_v56, 0.0  ;;  %v1068_v48 = vpack.c.bf16 %v1028_v45, %v1027_v43  ;;  %v3604_v49 = vpop.f32.mrf.mxu1  ;;  %v1032_v54 = vmax.f32 %v930_v58, 0.0 }
 0x124   : > { %v857_v60 = vpop.f32.mrf.mxu0  ;;  %3639 = vmatmul.mubr.msk.bf16.gmra.mxu1 %vm595_vm0, %v1060_v53  ;;  %v1031_v53 = vmax.f32 %v927_v42, 0.0  ;;  %v1071_v59 = vpack.c.bf16 %v1034_v52, %v1033_v51  ;;  %v1040_v17 = vmax.f32 %v962_v10, 0.0  ;;  %v975_v19 = vadd.f32 %v3604_v49, %v4397_v38 }
 0x125   : > { %v858_v6 = vadd.f32 %v4397_v38, %v857_v60  ;;  %v1016_v15 = vmax.f32 %v866_v57, 0.0  ;;  %v966_v56 = vpop.f32.mrf.mxu1  ;;  %v3859_v57 = vld [vmem:[%s5228_s5] sm:$0xff]   ;;  %v954_v60 = vadd.f32 %v4397_v38, %v953_v46 }
 0x126   : > { %3676 = vmatprep.subr.bf16.mxu0 %v3859_v57  ;;  %v1070_v34 = vpack.c.bf16 %v1032_v54, %v1031_v53 }
 0x127   : > { %v1014_v1 = vmax.f32 %v858_v6, 0.0  ;;  %v1062_v12 = vpack.c.bf16 %v1016_v15, %v1015_v4  ;;  %v946_v6 = vadd.f32 %v3597_v16, %v4397_v38  ;;  %v3605_v62 = vpop.f32.mrf.mxu1  ;;  %3677 = vmatpush3.bf16.msra.mxu0 %v3859_v57  ;;  %v1037_v15 = vmax.f32 %v951_v13, 0.0 }
 0x128   : > { %v1038_v63 = vmax.f32 %v954_v60, 0.0  ;;  %v1039_v16 = vmax.f32 %v959_v55, 0.0  ;;  %v978_v21 = vadd.f32 %v3605_v62, %v4397_v38 }
 0x129   : > { %v1061_v5 = vpack.c.bf16 %v1014_v1, %v1013_v0  ;;  %v1035_v0 = vmax.f32 %v943_v61, 0.0  ;;  %v1036_v1 = vmax.f32 %v946_v6, 0.0  ;;  %v969_v4 = vpop.f32.mrf.mxu1 }
 0x12a   : > { %v970_v8 = vadd.f32 %v4397_v38, %v969_v4  ;;  %v1074_v24 = vpack.c.bf16 %v1040_v17, %v1039_v16  ;;  %v1044_v2 = vmax.f32 %v978_v21, 0.0 }
 0x12b   : > { %3642 = vmatprep.mubr.msk.bf16.mxu1 %vm595_vm0, %v1061_v5  ;;  %v1073_v5 = vpack.c.bf16 %v1038_v63, %v1037_v15  ;;  %v1072_v9 = vpack.c.bf16 %v1036_v1, %v1035_v0 }
 0x12c   : > { %3643 = vmatmul.mubr.msk.bf16.gmra.mxu1 %vm595_vm0, %v1062_v12  ;;  %v1042_v14 = vmax.f32 %v970_v8, 0.0 }
 0x12d   : > { %3646 = vmatprep.mubr.msk.bf16.mxu1 %vm595_vm0, %v1063_v7  ;;  %v967_v7 = vadd.f32 %v4397_v38, %v966_v56 }
 0x12f   : > { %v1041_v12 = vmax.f32 %v967_v7, 0.0 }
 0x131   : > { %v1075_v18 = vpack.c.bf16 %v1042_v14, %v1041_v12 }
 0x134   : > { %3647 = vmatmul.mubr.msk.bf16.gmra.mxu1 %vm595_vm0, %v1064_v11  ;;  %v4552_v11 = vld [vmem:[%s5227_s4] ss:$0 sm:$0xff] }
 0x135   : > { %3650 = vmatprep.mubr.msk.bf16.mxu1 %vm595_vm0, %v1065_v33  ;;  %v1043_v33 = vmax.f32 %v975_v19, 0.0 }
 0x137   : > { %v1076_v22 = vpack.c.bf16 %v1044_v2, %v1043_v33 }
 0x13c   : > { %3651 = vmatmul.mubr.msk.bf16.gmra.mxu1 %vm595_vm0, %v1066_v20 }
 0x13d   : > { %3654 = vmatprep.mubr.msk.bf16.mxu1 %vm595_vm0, %v1067_v35 }
 0x144   : > { %3655 = vmatmul.mubr.msk.bf16.gmra.mxu1 %vm595_vm0, %v1068_v48 }
 0x145   : > { %3658 = vmatprep.mubr.msk.bf16.mxu1 %vm595_vm0, %v1069_v23 }
 0x14c   : > { %3659 = vmatmul.mubr.msk.bf16.gmra.mxu1 %vm595_vm0, %v1070_v34 }
 0x14d   : > { %3662 = vmatprep.mubr.msk.bf16.mxu1 %vm595_vm0, %v1071_v59 }
 0x154   : > { %3663 = vmatmul.mubr.msk.bf16.gmra.mxu1 %vm595_vm0, %v1072_v9 }
 0x155   : > { %3666 = vmatprep.mubr.msk.bf16.mxu1 %vm595_vm0, %v1073_v5 }
 0x15c   : > { %3667 = vmatmul.mubr.msk.bf16.gmra.mxu1 %vm595_vm0, %v1074_v24 }
 0x15d   : > { %3670 = vmatprep.mubr.msk.bf16.mxu1 %vm595_vm0, %v1075_v18 }
 0x164   : > { %3671 = vmatmul.mubr.msk.bf16.gmra.mxu1 %vm595_vm0, %v1076_v22 }
 0x1ac   : > { %v3612_v25 = vpop.f32.mrf.mxu1 }
 0x1ad   : > { %v1239_v26 = vadd.f32 %v3612_v25, %v4552_v11 }
 0x1ae   : > { %v1230_v27 = vpop.f32.mrf.mxu1 }
 0x1af   : > { %v3317_v28 = vmul.f32 -1.442695, %v1239_v26  ;;  %v1231_v38 = vadd.f32 %v4552_v11, %v1230_v27 }
 0x1b0   : > { %v3613_v30 = vpop.f32.mrf.mxu1 }
 0x1b1   : > { %3860 = vpow2.f32 %v3317_v28  ;;  %v3315_v31 = vmul.f32 -1.442695, %v1231_v38  ;;  %v1242_v32 = vadd.f32 %v3613_v30, %v4552_v11 }
 0x1b2   : > { %v1233_v50 = vpop.f32.mrf.mxu1 }
 0x1b3   : > { %3862 = vpow2.f32 %v3315_v31  ;;  %v3318_v35 = vmul.f32 -1.442695, %v1242_v32  ;;  %v1234_v3 = vadd.f32 %v4552_v11, %v1233_v50 }
 0x1b4   : > { %v3616_v36 = vpop.f32.mrf.mxu1 }
 0x1b5   : > { %3864 = vpow2.f32 %v3318_v35  ;;  %v3316_v20 = vmul.f32 -1.442695, %v1234_v3  ;;  %v1255_v29 = vadd.f32 %v3616_v36, %v4552_v11 }
 0x1b6   : > { %v1246_v37 = vpop.f32.mrf.mxu1 }
 0x1b7   : > { %3866 = vpow2.f32 %v3316_v20  ;;  %v3321_v39 = vmul.f32 -1.442695, %v1255_v29  ;;  %v1247_v40 = vadd.f32 %v4552_v11, %v1246_v37 }
 0x1b8   : > { %v3617_v41 = vpop.f32.mrf.mxu1 }
 0x1b9   : > { %3868 = vpow2.f32 %v3321_v39  ;;  %v3319_v43 = vmul.f32 -1.442695, %v1247_v40  ;;  %v1258_v45 = vadd.f32 %v3617_v41, %v4552_v11 }
 0x1ba   : > { %v1249_v46 = vpop.f32.mrf.mxu1 }
 0x1bb   : > { %3870 = vpow2.f32 %v3319_v43  ;;  %v3322_v23 = vmul.f32 -1.442695, %v1258_v45  ;;  %v1250_v44 = vadd.f32 %v4552_v11, %v1249_v46 }
 0x1bc   : > { %v3620_v47 = vpop.f32.mrf.mxu1 }
 0x1bd   : > { %3872 = vpow2.f32 %v3322_v23  ;;  %v3320_v48 = vmul.f32 -1.442695, %v1250_v44  ;;  %v1271_v42 = vadd.f32 %v3620_v47, %v4552_v11 }
 0x1be   : > { %v3861_v58 = vpop.eup %3860  ;;  %v1262_v49 = vpop.f32.mrf.mxu1 }
 0x1bf   : > { %v1679_v51 = vadd.f32 1.0, %v3861_v58  ;;  %3874 = vpow2.f32 %v3320_v48  ;;  %v3325_v52 = vmul.f32 -1.442695, %v1271_v42  ;;  %v1263_v53 = vadd.f32 %v4552_v11, %v1262_v49 }
 0x1c0   : > { %v3863_v54 = vpop.eup %3862  ;;  %v3621_v56 = vpop.f32.mrf.mxu1 }
 0x1c1   : > { %3876 = vrcp.f32 %v1679_v51  ;;  %v1677_v57 = vadd.f32 1.0, %v3863_v54  ;;  %v3323_v59 = vmul.f32 -1.442695, %v1263_v53  ;;  %v1274_v13 = vadd.f32 %v3621_v56, %v4552_v11 }
 0x1c2   : > { %v3865_v60 = vpop.eup %3864  ;;  %3878 = vpow2.f32 %v3325_v52  ;;  %v1265_v34 = vpop.f32.mrf.mxu1 }
 0x1c3   : > { %3880 = vrcp.f32 %v1677_v57  ;;  %v1680_v61 = vadd.f32 1.0, %v3865_v60  ;;  %v3326_v6 = vmul.f32 -1.442695, %v1274_v13  ;;  %v1266_v62 = vadd.f32 %v4552_v11, %v1265_v34 }
 0x1c4   : > { %v3867_v15 = vpop.eup %3866  ;;  %3882 = vpow2.f32 %v3323_v59  ;;  %v3624_v63 = vpop.f32.mrf.mxu1 }
 0x1c5   : > { %3884 = vrcp.f32 %v1680_v61  ;;  %v1678_v0 = vadd.f32 1.0, %v3867_v15  ;;  %v3324_v1 = vmul.f32 -1.442695, %v1266_v62  ;;  %v1287_v4 = vadd.f32 %v3624_v63, %v4552_v11 }
 0x1c6   : > { %v3869_v5 = vpop.eup %3868  ;;  %3886 = vpow2.f32 %v3326_v6  ;;  %v1278_v7 = vpop.f32.mrf.mxu1 }
 0x1c7   : > { %3888 = vrcp.f32 %v1678_v0  ;;  %v1683_v8 = vadd.f32 1.0, %v3869_v5  ;;  %v3329_v9 = vmul.f32 -1.442695, %v1287_v4  ;;  %v1279_v55 = vadd.f32 %v4552_v11, %v1278_v7 }
 0x1c8   : > { %v3871_v10 = vpop.eup %3870  ;;  %3890 = vpow2.f32 %v3324_v1  ;;  %v3625_v12 = vpop.f32.mrf.mxu1 }
 0x1c9   : > { %3892 = vrcp.f32 %v1683_v8  ;;  %v1681_v14 = vadd.f32 1.0, %v3871_v10  ;;  %v3327_v16 = vmul.f32 -1.442695, %v1279_v55  ;;  %v1290_v17 = vadd.f32 %v3625_v12, %v4552_v11 }
 0x1ca   : > { %v3873_v18 = vpop.eup %3872  ;;  %3894 = vpow2.f32 %v3329_v9  ;;  %v1281_v24 = vpop.f32.mrf.mxu1 }
 0x1cb   : > { %3896 = vrcp.f32 %v1681_v14  ;;  %v1684_v19 = vadd.f32 1.0, %v3873_v18  ;;  %v3330_v21 = vmul.f32 -1.442695, %v1290_v17  ;;  %v1282_v33 = vadd.f32 %v4552_v11, %v1281_v24 }
 0x1cc   : > { %v3875_v2 = vpop.eup %3874  ;;  %3898 = vpow2.f32 %v3327_v16  ;;  %v3628_v22 = vpop.f32.mrf.mxu1 }
 0x1cd   : > { %3900 = vrcp.f32 %v1684_v19  ;;  %v1682_v25 = vadd.f32 1.0, %v3875_v2  ;;  %v3328_v26 = vmul.f32 -1.442695, %v1282_v33  ;;  %v1303_v27 = vadd.f32 %v3628_v22, %v4552_v11 }
 0x1ce   : > { %v4571_v28 = vpop.eup %3876  ;;  %3902 = vpow2.f32 %v3330_v21  ;;  %v1294_v38 = vpop.f32.mrf.mxu1 }
 0x1cf   : > { %v3879_v30 = vpop.eup %3878  ;;  %3904 = vrcp.f32 %v1682_v25  ;;  %v3333_v31 = vmul.f32 -1.442695, %v1303_v27  ;;  %v1295_v32 = vadd.f32 %v4552_v11, %v1294_v38  ;;  %v1871_v50 = vmul.f32 %v4571_v28, %v4571_v28 }
 0x1d0   : > { %v3881_v35 = vpop.eup %3880  ;;  %v1687_v3 = vadd.f32 1.0, %v3879_v30  ;;  %3906 = vpow2.f32 %v3328_v26  ;;  %v3629_v36 = vpop.f32.mrf.mxu1 }
 0x1d1   : > { %v3883_v20 = vpop.eup %3882  ;;  %3908 = vpow2.f32 %v3333_v31  ;;  %v3331_v29 = vmul.f32 -1.442695, %v1295_v32  ;;  %v1306_v37 = vadd.f32 %v3629_v36, %v4552_v11  ;;  %v1939_v39 = vsel %vm595_vm0, %v1871_v50, 0.0 }
 0x1d2   : > { %v3885_v40 = vpop.eup %3884  ;;  %3910 = vrcp.f32 %v1687_v3  ;;  %v1685_v41 = vadd.f32 1.0, %v3883_v20  ;;  %1940 = vadd.xlane.f32.xlu0 %v1939_v39  ;;  %v1297_v43 = vpop.f32.mrf.mxu1  ;;  %v1869_v45 = vmul.f32 %v3881_v35, %v3881_v35 }
 0x1d3   : > { %v3887_v46 = vpop.eup %3886  ;;  %3912 = vpow2.f32 %v3331_v29  ;;  %v3334_v23 = vmul.f32 -1.442695, %v1306_v37  ;;  %v1298_v44 = vadd.f32 %v4552_v11, %v1297_v43  ;;  %v1872_v47 = vmul.f32 %v3885_v40, %v3885_v40 }
 0x1d4   : > { %v3889_v48 = vpop.eup %3888  ;;  %3914 = vrcp.f32 %v1685_v41  ;;  %v1688_v42 = vadd.f32 1.0, %v3887_v46  ;;  %v3632_v58 = vpop.f32.mrf.mxu1  ;;  %v1933_v49 = vsel %vm595_vm0, %v1869_v45, 0.0  ;;  %v2126_v51 = vpack.c.bf16 %v3885_v40, %v4571_v28 }
 0x1d5   : > { %v3891_v52 = vpop.eup %3890  ;;  %3916 = vpow2.f32 %v3334_v23  ;;  %v3332_v53 = vmul.f32 -1.442695, %v1298_v44  ;;  %v1319_v54 = vadd.f32 %v3632_v58, %v4552_v11  ;;  %v1942_v56 = vsel %vm595_vm0, %v1872_v47, 0.0 }
 0x1d6   : > { %v4583_v57 = vpop.eup %3892  ;;  %3918 = vrcp.f32 %v1688_v42  ;;  %v1686_v59 = vadd.f32 1.0, %v3891_v52  ;;  %1943 = vadd.xlane.f32.xlu1 %v1942_v56  ;;  %v1310_v13 = vpop.f32.mrf.mxu1  ;;  %1934 = vadd.xlane.f32.xlu0 %v1933_v49  ;;  %v2125_v60 = vpack.c.bf16 %v3889_v48, %v3881_v35  ;;  %v1870_v34 = vmul.f32 %v3889_v48, %v3889_v48 }
 0x1d7   : > { %v3895_v61 = vpop.eup %3894  ;;  %3920 = vpow2.f32 %v3332_v53  ;;  %v3337_v6 = vmul.f32 -1.442695, %v1319_v54  ;;  %v1311_v62 = vadd.f32 %v4552_v11, %v1310_v13  ;;  %v1875_v15 = vmul.f32 %v4583_v57, %v4583_v57 }
 0x1d8   : > { %v3897_v63 = vpop.eup %3896  ;;  %3922 = vrcp.f32 %v1686_v59  ;;  %v1691_v0 = vadd.f32 1.0, %v3895_v61  ;;  %3678 = vmatprep.mubr.msk.bf16.mxu0 %vm595_vm0, %v2125_v60  ;;  %v3633_v1 = vpop.f32.mrf.mxu1  ;;  %v1936_v4 = vsel %vm595_vm0, %v1870_v34, 0.0 }
 0x1d9   : > { %v3899_v5 = vpop.eup %3898  ;;  %3924 = vpow2.f32 %v3337_v6  ;;  %v3335_v7 = vmul.f32 -1.442695, %v1311_v62  ;;  %v1322_v8 = vadd.f32 %v3633_v1, %v4552_v11  ;;  %3679 = vmatmul.mubr.msk.bf16.vlgmr.msra.gmra.mxu0 %vm595_vm0, %v2126_v51  ;;  %v1951_v9 = vsel %vm595_vm0, %v1875_v15, 0.0 }
 0x1da   : > { %v3901_v55 = vpop.eup %3900  ;;  %3926 = vrcp.f32 %v1691_v0  ;;  %v1689_v10 = vadd.f32 1.0, %v3899_v5  ;;  %1952 = vadd.xlane.f32.xlu1 %v1951_v9  ;;  %v1313_v12 = vpop.f32.mrf.mxu1  ;;  %1937 = vadd.xlane.f32.xlu0 %v1936_v4  ;;  %v1873_v14 = vmul.f32 %v3897_v63, %v3897_v63 }
 0x1db   : > { %v3903_v16 = vpop.eup %3902  ;;  %3928 = vpow2.f32 %v3335_v7  ;;  %v3338_v17 = vmul.f32 -1.442695, %v1322_v8  ;;  %v1314_v18 = vadd.f32 %v4552_v11, %v1313_v12  ;;  %v1876_v24 = vmul.f32 %v3901_v55, %v3901_v55 }
 0x1dc   : > { %v3905_v19 = vpop.eup %3904  ;;  %3930 = vrcp.f32 %v1689_v10  ;;  %v1692_v21 = vadd.f32 1.0, %v3903_v16  ;;  %v3636_v33 = vpop.f32.mrf.mxu1  ;;  %v1945_v2 = vsel %vm595_vm0, %v1873_v14, 0.0  ;;  %v2128_v22 = vpack.c.bf16 %v3901_v55, %v4583_v57 }
 0x1dd   : > { %v3907_v25 = vpop.eup %3906  ;;  %3932 = vpow2.f32 %v3338_v17  ;;  %v3336_v26 = vmul.f32 -1.442695, %v1314_v18  ;;  %v1335_v27 = vadd.f32 %v3636_v33, %v4552_v11  ;;  %v1954_v28 = vsel %vm595_vm0, %v1876_v24, 0.0 }
 0x1de   : > { %v3909_v38 = vpop.eup %3908  ;;  %3934 = vrcp.f32 %v1692_v21  ;;  %v1690_v30 = vadd.f32 1.0, %v3907_v25  ;;  %1955 = vadd.xlane.f32.xlu1 %v1954_v28  ;;  %v1326_v31 = vpop.f32.mrf.mxu1  ;;  %1946 = vadd.xlane.f32.xlu0 %v1945_v2  ;;  %v2127_v32 = vpack.c.bf16 %v3905_v19, %v3897_v63  ;;  %v1874_v50 = vmul.f32 %v3905_v19, %v3905_v19 }
 0x1df   : > { %v4598_v35 = vpop.eup %3910  ;;  %v1695_v3 = vadd.f32 1.0, %v3909_v38  ;;  %3936 = vpow2.f32 %v3336_v26  ;;  %v3341_v36 = vmul.f32 -1.442695, %v1335_v27  ;;  %v1327_v20 = vadd.f32 %v4552_v11, %v1326_v31 }
 0x1e0   : > { %v3913_v29 = vpop.eup %3912  ;;  %3938 = vrcp.f32 %v1690_v30  ;;  %3682 = vmatprep.mubr.msk.bf16.mxu0 %vm595_vm0, %v2127_v32  ;;  %v3637_v37 = vpop.f32.mrf.mxu1  ;;  %v1948_v39 = vsel %vm595_vm0, %v1874_v50, 0.0  ;;  %v1879_v40 = vmul.f32 %v4598_v35, %v4598_v35 }
 0x1e1   : > { %v3915_v41 = vpop.eup %3914  ;;  %3940 = vrcp.f32 %v1695_v3  ;;  %v1693_v43 = vadd.f32 1.0, %v3913_v29  ;;  %v3339_v45 = vmul.f32 -1.442695, %v1327_v20  ;;  %v1338_v46 = vadd.f32 %v3637_v37, %v4552_v11  ;;  %3683 = vmatmul.mubr.msk.bf16.gmra.mxu0 %vm595_vm0, %v2128_v22 }
 0x1e2   : > { %v3917_v23 = vpop.eup %3916  ;;  %3942 = vpow2.f32 %v3341_v36  ;;  %v1329_v44 = vpop.f32.mrf.mxu1  ;;  %1949 = vadd.xlane.f32.xlu1 %v1948_v39  ;;  %v1963_v52 = vsel %vm595_vm0, %v1879_v40, 0.0  ;;  %v1877_v54 = vmul.f32 %v3915_v41, %v3915_v41 }
 0x1e3   : > { %v3919_v47 = vpop.eup %3918  ;;  %3944 = vrcp.f32 %v1693_v43  ;;  %v1696_v48 = vadd.f32 1.0, %v3917_v23  ;;  %v3342_v42 = vmul.f32 -1.442695, %v1338_v46  ;;  %v1330_v58 = vadd.f32 %v4552_v11, %v1329_v44 }
 0x1e4   : > { %v3921_v49 = vpop.eup %3920  ;;  %3946 = vpow2.f32 %v3339_v45  ;;  %v3640_v51 = vpop.f32.mrf.mxu1  ;;  %v1880_v53 = vmul.f32 %v3919_v47, %v3919_v47  ;;  %v2130_v62 = vpack.c.bf16 %v3919_v47, %v4598_v35  ;;  %v1957_v7 = vsel %vm595_vm0, %v1877_v54, 0.0 }
 0x1e5   : > { %v3923_v56 = vpop.eup %3922  ;;  %3948 = vrcp.f32 %v1696_v48  ;;  %v1694_v57 = vadd.f32 1.0, %v3921_v49  ;;  %v3340_v59 = vmul.f32 -1.442695, %v1330_v58  ;;  %v1351_v13 = vadd.f32 %v3640_v51, %v4552_v11 }
 0x1e6   : > { %v3925_v60 = vpop.eup %3924  ;;  %3950 = vpow2.f32 %v3342_v42  ;;  %v1342_v34 = vpop.f32.mrf.mxu1  ;;  %1964 = vadd.xlane.f32.xlu1 %v1963_v52  ;;  %v1966_v61 = vsel %vm595_vm0, %v1880_v53, 0.0  ;;  %v2129_v6 = vpack.c.bf16 %v3923_v56, %v3915_v41  ;;  %v1878_v9 = vmul.f32 %v3923_v56, %v3923_v56 }
 0x1e7   : > { %v4612_v15 = vpop.eup %3926  ;;  %3952 = vrcp.f32 %v1694_v57  ;;  %v1699_v63 = vadd.f32 1.0, %v3925_v60  ;;  %v3345_v0 = vmul.f32 -1.442695, %v1351_v13  ;;  %v1343_v1 = vadd.f32 %v4552_v11, %v1342_v34  ;;  %1967 = vadd.xlane.f32.xlu0 %v1966_v61 }
 0x1e8   : > { %v3929_v4 = vpop.eup %3928  ;;  %3954 = vpow2.f32 %v3340_v59  ;;  %3686 = vmatprep.mubr.msk.bf16.mxu0 %vm595_vm0, %v2129_v6  ;;  %v3641_v5 = vpop.f32.mrf.mxu1  ;;  %v1883_v8 = vmul.f32 %v4612_v15, %v4612_v15  ;;  %v1960_v25 = vsel %vm595_vm0, %v1878_v9, 0.0 }
 0x1e9   : > { %v3931_v55 = vpop.eup %3930  ;;  %3956 = vrcp.f32 %v1699_v63  ;;  %v1697_v10 = vadd.f32 1.0, %v3929_v4  ;;  %v3343_v12 = vmul.f32 -1.442695, %v1343_v1  ;;  %v1354_v14 = vadd.f32 %v3641_v5, %v4552_v11  ;;  %3687 = vmatmul.mubr.msk.bf16.gmra.mxu0 %vm595_vm0, %v2130_v62 }
 0x1ea   : > { %v3933_v16 = vpop.eup %3932  ;;  %3958 = vpow2.f32 %v3345_v0  ;;  %v1345_v17 = vpop.f32.mrf.mxu1  ;;  %1958 = vadd.xlane.f32.xlu1 %v1957_v7  ;;  %v1975_v18 = vsel %vm595_vm0, %v1883_v8, 0.0  ;;  %v1881_v27 = vmul.f32 %v3931_v55, %v3931_v55 }
 0x1eb   : > { %v3935_v24 = vpop.eup %3934  ;;  %3960 = vrcp.f32 %v1697_v10  ;;  %v1700_v19 = vadd.f32 1.0, %v3933_v16  ;;  %v3346_v21 = vmul.f32 -1.442695, %v1354_v14  ;;  %v1346_v33 = vadd.f32 %v4552_v11, %v1345_v17  ;;  %1976 = vadd.xlane.f32.xlu0 %v1975_v18 }
 0x1ec   : > { %v3937_v2 = vpop.eup %3936  ;;  %3962 = vpow2.f32 %v3343_v12  ;;  %v3644_v22 = vpop.f32.mrf.mxu1  ;;  %v1884_v26 = vmul.f32 %v3935_v24, %v3935_v24  ;;  %v2132_v39 = vpack.c.bf16 %v3935_v24, %v4612_v15  ;;  %v1969_v47 = vsel %vm595_vm0, %v1881_v27, 0.0 }
 0x1ed   : > { %v3939_v28 = vpop.eup %3938  ;;  %3964 = vrcp.f32 %v1700_v19  ;;  %v1698_v38 = vadd.f32 1.0, %v3937_v2  ;;  %v3344_v30 = vmul.f32 -1.442695, %v1346_v33  ;;  %v1367_v31 = vadd.f32 %v3644_v22, %v4552_v11 }
 0x1ee   : > { %v4625_v32 = vpop.eup %3940  ;;  %3966 = vpow2.f32 %v3346_v21  ;;  %v1358_v50 = vpop.f32.mrf.mxu1  ;;  %1961 = vadd.xlane.f32.xlu1 %v1960_v25  ;;  %v1978_v35 = vsel %vm595_vm0, %v1884_v26, 0.0  ;;  %v2131_v3 = vpack.c.bf16 %v3939_v28, %v3931_v55  ;;  %v1882_v36 = vmul.f32 %v3939_v28, %v3939_v28 }
 0x1ef   : > { %v3943_v20 = vpop.eup %3942  ;;  %3968 = vrcp.f32 %v1698_v38  ;;  %v3349_v29 = vmul.f32 -1.442695, %v1367_v31  ;;  %v1359_v37 = vadd.f32 %v4552_v11, %v1358_v50  ;;  %1979 = vadd.xlane.f32.xlu0 %v1978_v35  ;;  %v1887_v45 = vmul.f32 %v4625_v32, %v4625_v32 }
 0x1f0   : > { %v3945_v40 = vpop.eup %3944  ;;  %v1703_v41 = vadd.f32 1.0, %v3943_v20  ;;  %3970 = vpow2.f32 %v3344_v30  ;;  %3690 = vmatprep.mubr.msk.bf16.mxu0 %vm595_vm0, %v2131_v3  ;;  %v3645_v43 = vpop.f32.mrf.mxu1  ;;  %v1972_v49 = vsel %vm595_vm0, %v1882_v36, 0.0 }
 0x1f1   : > { %v3947_v46 = vpop.eup %3946  ;;  %3972 = vpow2.f32 %v3349_v29  ;;  %v3347_v23 = vmul.f32 -1.442695, %v1359_v37  ;;  %v1370_v44 = vadd.f32 %v3645_v43, %v4552_v11  ;;  %3691 = vmatmul.mubr.msk.bf16.gmra.mxu0 %vm595_vm0, %v2132_v39  ;;  %v1987_v59 = vsel %vm595_vm0, %v1887_v45, 0.0 }
 0x1f2   : > { %v3949_v48 = vpop.eup %3948  ;;  %3974 = vrcp.f32 %v1703_v41  ;;  %v1701_v42 = vadd.f32 1.0, %v3947_v46  ;;  %v1361_v58 = vpop.f32.mrf.mxu1  ;;  %1970 = vadd.xlane.f32.xlu1 %v1969_v47  ;;  %v1885_v0 = vmul.f32 %v3945_v40, %v3945_v40 }
 0x1f3   : > { %v3951_v51 = vpop.eup %3950  ;;  %3976 = vpow2.f32 %v3347_v23  ;;  %v3350_v52 = vmul.f32 -1.442695, %v1370_v44  ;;  %v1362_v53 = vadd.f32 %v4552_v11, %v1361_v58  ;;  %1973 = vadd.xlane.f32.xlu0 %v1972_v49  ;;  %v2134_v7 = vpack.c.bf16 %v3949_v48, %v4625_v32 }
 0x1f4   : > { %v3953_v54 = vpop.eup %3952  ;;  %3978 = vrcp.f32 %v1701_v42  ;;  %v1704_v56 = vadd.f32 1.0, %v3951_v51  ;;  %v3648_v57 = vpop.f32.mrf.mxu1  ;;  %v1888_v12 = vmul.f32 %v3949_v48, %v3949_v48  ;;  %v1981_v21 = vsel %vm595_vm0, %v1885_v0, 0.0 }
 0x1f5   : > { %v3955_v13 = vpop.eup %3954  ;;  %3980 = vpow2.f32 %v3350_v52  ;;  %v3348_v60 = vmul.f32 -1.442695, %v1362_v53  ;;  %v1383_v34 = vadd.f32 %v3648_v57, %v4552_v11  ;;  %v2133_v61 = vpack.c.bf16 %v3953_v54, %v3945_v40 }
 0x1f6   : > { %v4640_v6 = vpop.eup %3956  ;;  %3982 = vrcp.f32 %v1704_v56  ;;  %v1702_v62 = vadd.f32 1.0, %v3955_v13  ;;  %v1374_v15 = vpop.f32.mrf.mxu1  ;;  %v1886_v63 = vmul.f32 %v3953_v54, %v3953_v54  ;;  %v1990_v28 = vsel %vm595_vm0, %v1888_v12, 0.0 }
 0x1f7   : > { %v3959_v1 = vpop.eup %3958  ;;  %3984 = vpow2.f32 %v3348_v60  ;;  %v3353_v4 = vmul.f32 -1.442695, %v1383_v34  ;;  %v1375_v5 = vadd.f32 %v4552_v11, %v1374_v15  ;;  %1988 = vadd.xlane.f32.xlu0 %v1987_v59  ;;  %3694 = vmatprep.mubr.msk.bf16.mxu0 %vm595_vm0, %v2133_v61  ;;  %v1891_v20 = vmul.f32 %v4640_v6, %v4640_v6 }
 0x1f8   : > { %v3961_v8 = vpop.eup %3960  ;;  %3986 = vrcp.f32 %v1702_v62  ;;  %v1707_v9 = vadd.f32 1.0, %v3959_v1  ;;  %v3649_v55 = vpop.f32.mrf.mxu1  ;;  %v1984_v10 = vsel %vm595_vm0, %v1886_v63, 0.0 }
 0x1f9   : > { %v3963_v14 = vpop.eup %3962  ;;  %3988 = vpow2.f32 %v3353_v4  ;;  %v3351_v16 = vmul.f32 -1.442695, %v1375_v5  ;;  %v1386_v17 = vadd.f32 %v3649_v55, %v4552_v11  ;;  %1985 = vadd.xlane.f32.xlu1 %v1984_v10  ;;  %3695 = vmatmul.mubr.msk.bf16.gmra.mxu0 %vm595_vm0, %v2134_v7  ;;  %v1889_v46 = vmul.f32 %v3961_v8, %v3961_v8 }
 0x1fa   : > { %v3965_v18 = vpop.eup %3964  ;;  %3990 = vrcp.f32 %v1707_v9  ;;  %v1705_v24 = vadd.f32 1.0, %v3963_v14  ;;  %v1377_v19 = vpop.f32.mrf.mxu1  ;;  %v1999_v51 = vsel %vm595_vm0, %v1891_v20, 0.0 }
 0x1fb   : > { %v3967_v33 = vpop.eup %3966  ;;  %3992 = vpow2.f32 %v3351_v16  ;;  %v3354_v2 = vmul.f32 -1.442695, %v1386_v17  ;;  %v1378_v22 = vadd.f32 %v4552_v11, %v1377_v19  ;;  %1982 = vadd.xlane.f32.xlu0 %v1981_v21  ;;  %v2136_v36 = vpack.c.bf16 %v3965_v18, %v4640_v6 }
 0x1fc   : > { %v4650_v25 = vpop.eup %3968  ;;  %3994 = vrcp.f32 %v1705_v24  ;;  %v1708_v26 = vadd.f32 1.0, %v3967_v33  ;;  %v3652_v27 = vpop.f32.mrf.mxu1  ;;  %v1993_v13 = vsel %vm595_vm0, %v1889_v46, 0.0  ;;  %v1892_v60 = vmul.f32 %v3965_v18, %v3965_v18 }
 0x1fd   : > { %v3971_v38 = vpop.eup %3970  ;;  %3996 = vpow2.f32 %v3354_v2  ;;  %v3352_v30 = vmul.f32 -1.442695, %v1378_v22  ;;  %v1399_v31 = vadd.f32 %v3652_v27, %v4552_v11  ;;  %v2135_v32 = vpack.c.bf16 %v4650_v25, %v3961_v8 }
 0x1fe   : > { %v3973_v50 = vpop.eup %3972  ;;  %3998 = vrcp.f32 %v1708_v26  ;;  %v1706_v35 = vadd.f32 1.0, %v3971_v38  ;;  %v1390_v3 = vpop.f32.mrf.mxu1  ;;  %v2002_v33 = vsel %vm595_vm0, %v1892_v60, 0.0  ;;  %v1890_v2 = vmul.f32 %v4650_v25, %v4650_v25 }
 0x1ff   : > { %v4658_v29 = vpop.eup %3974  ;;  %v1711_v37 = vadd.f32 1.0, %v3973_v50  ;;  %4000 = vpow2.f32 %v3352_v30  ;;  %v3357_v39 = vmul.f32 -1.442695, %v1399_v31  ;;  %v1391_v40 = vadd.f32 %v4552_v11, %v1390_v3  ;;  %1991 = vadd.xlane.f32.xlu0 %v1990_v28  ;;  %3698 = vmatprep.mubr.msk.bf16.mxu0 %vm595_vm0, %v2135_v32 }
 0x200   : > { %v3977_v41 = vpop.eup %3976  ;;  %4002 = vrcp.f32 %v1706_v35  ;;  %v3653_v43 = vpop.f32.mrf.mxu1  ;;  %v1895_v45 = vmul.f32 %v4658_v29, %v4658_v29 }
 0x201   : > { %v4664_v23 = vpop.eup %3978  ;;  %4004 = vrcp.f32 %v1711_v37  ;;  %v1709_v44 = vadd.f32 1.0, %v3977_v41  ;;  %v3355_v47 = vmul.f32 -1.442695, %v1391_v40  ;;  %v1402_v48 = vadd.f32 %v3653_v43, %v4552_v11  ;;  %3699 = vmatmul.mubr.msk.bf16.gmra.mxu0 %vm595_vm0, %v2136_v36 }
 0x202   : > { %v3981_v42 = vpop.eup %3980  ;;  %4006 = vpow2.f32 %v3357_v39  ;;  %v1393_v58 = vpop.f32.mrf.mxu1  ;;  %v2011_v49 = vsel %vm595_vm0, %v1895_v45, 0.0  ;;  %v1893_v39 = vmul.f32 %v4664_v23, %v4664_v23 }
 0x203   : > { %v4670_v52 = vpop.eup %3982  ;;  %4008 = vrcp.f32 %v1709_v44  ;;  %v1712_v53 = vadd.f32 1.0, %v3981_v42  ;;  %v3358_v54 = vmul.f32 -1.442695, %v1402_v48  ;;  %v1394_v56 = vadd.f32 %v4552_v11, %v1393_v58  ;;  %2012 = vadd.xlane.f32.xlu1 %v2011_v49  ;;  %2000 = vadd.xlane.f32.xlu0 %v1999_v51 }
 0x204   : > { %v3985_v57 = vpop.eup %3984  ;;  %4010 = vpow2.f32 %v3355_v47  ;;  %v3656_v59 = vpop.f32.mrf.mxu1  ;;  %v2138_v4 = vpack.c.bf16 %v4670_v52, %v4658_v29  ;;  %v1996_v29 = vsel %vm595_vm0, %v1890_v2, 0.0 }
 0x205   : > { %v3987_v34 = vpop.eup %3986  ;;  %4012 = vrcp.f32 %v1712_v53  ;;  %v1710_v61 = vadd.f32 1.0, %v3985_v57  ;;  %v3356_v6 = vmul.f32 -1.442695, %v1394_v56  ;;  %v1415_v62 = vadd.f32 %v3656_v59, %v4552_v11 }
 0x206   : > { %v3989_v15 = vpop.eup %3988  ;;  %4014 = vpow2.f32 %v3358_v54  ;;  %v1406_v63 = vpop.f32.mrf.mxu1  ;;  %v2137_v0 = vpack.c.bf16 %v3987_v34, %v4664_v23  ;;  %v1894_v1 = vmul.f32 %v3987_v34, %v3987_v34  ;;  %v2005_v56 = vsel %vm595_vm0, %v1893_v39, 0.0 }
 0x207   : > { %v4678_v5 = vpop.eup %3990  ;;  %4016 = vrcp.f32 %v1710_v61  ;;  %v1715_v7 = vadd.f32 1.0, %v3989_v15  ;;  %v3361_v8 = vmul.f32 -1.442695, %v1415_v62  ;;  %v1407_v9 = vadd.f32 %v4552_v11, %v1406_v63  ;;  %1994 = vadd.xlane.f32.xlu0 %v1993_v13 }
 0x208   : > { %v3993_v55 = vpop.eup %3992  ;;  %4018 = vpow2.f32 %v3356_v6  ;;  %3702 = vmatprep.mubr.msk.bf16.mxu0 %vm595_vm0, %v2137_v0  ;;  %v3657_v10 = vpop.f32.mrf.mxu1  ;;  %v2008_v12 = vsel %vm595_vm0, %v1894_v1, 0.0  ;;  %v1899_v14 = vmul.f32 %v4678_v5, %v4678_v5  ;;  %v1896_v57 = vmul.f32 %v4670_v52, %v4670_v52 }
 0x209   : > { %v3995_v16 = vpop.eup %3994  ;;  %4020 = vrcp.f32 %v1715_v7  ;;  %v1713_v17 = vadd.f32 1.0, %v3993_v55  ;;  %v3359_v18 = vmul.f32 -1.442695, %v1407_v9  ;;  %v1418_v24 = vadd.f32 %v3657_v10, %v4552_v11  ;;  %2009 = vadd.xlane.f32.xlu1 %v2008_v12  ;;  %3703 = vmatmul.mubr.msk.bf16.gmra.mxu0 %vm595_vm0, %v2138_v4 }
 0x20a   : > { %v3997_v19 = vpop.eup %3996  ;;  %4022 = vpow2.f32 %v3361_v8  ;;  %v1409_v21 = vpop.f32.mrf.mxu1  ;;  %v2023_v31 = vsel %vm595_vm0, %v1899_v14, 0.0  ;;  %v1897_v32 = vmul.f32 %v3995_v16, %v3995_v16  ;;  %v2014_v8 = vsel %vm595_vm0, %v1896_v57, 0.0 }
 0x20b   : > { %v3999_v22 = vpop.eup %3998  ;;  %4024 = vrcp.f32 %v1713_v17  ;;  %v1716_v26 = vadd.f32 1.0, %v3997_v19  ;;  %v3362_v27 = vmul.f32 -1.442695, %v1418_v24  ;;  %v1410_v28 = vadd.f32 %v4552_v11, %v1409_v21  ;;  %2003 = vadd.xlane.f32.xlu0 %v2002_v33 }
 0x20c   : > { %v4001_v38 = vpop.eup %4000  ;;  %4026 = vpow2.f32 %v3359_v18  ;;  %v3660_v30 = vpop.f32.mrf.mxu1  ;;  %v2140_v45 = vpack.c.bf16 %v3999_v22, %v4678_v5  ;;  %v2017_v48 = vsel %vm595_vm0, %v1897_v32, 0.0  ;;  %v1900_v42 = vmul.f32 %v3999_v22, %v3999_v22 }
 0x20d   : > { %v4003_v50 = vpop.eup %4002  ;;  %4028 = vrcp.f32 %v1716_v26  ;;  %v1714_v35 = vadd.f32 1.0, %v4001_v38  ;;  %v3360_v3 = vmul.f32 -1.442695, %v1410_v28  ;;  %v1431_v36 = vadd.f32 %v3660_v30, %v4552_v11  ;;  %2024 = vadd.xlane.f32.xlu1 %v2023_v31 }
 0x20e   : > { %v4693_v25 = vpop.eup %4004  ;;  %4030 = vpow2.f32 %v3362_v27  ;;  %v1422_v20 = vpop.f32.mrf.mxu1  ;;  %v2139_v37 = vpack.c.bf16 %v4003_v50, %v3995_v16  ;;  %v2026_v62 = vsel %vm595_vm0, %v1900_v42, 0.0  ;;  %v1898_v15 = vmul.f32 %v4003_v50, %v4003_v50 }
 0x20f   : > { %v4007_v40 = vpop.eup %4006  ;;  %4032 = vrcp.f32 %v1714_v35  ;;  %v3365_v41 = vmul.f32 -1.442695, %v1431_v36  ;;  %v1423_v43 = vadd.f32 %v4552_v11, %v1422_v20  ;;  %1997 = vadd.xlane.f32.xlu0 %v1996_v29  ;;  %v1903_v19 = vmul.f32 %v4693_v25, %v4693_v25 }
 0x210   : > { %v4700_v46 = vpop.eup %4008  ;;  %v1719_v44 = vadd.f32 1.0, %v4007_v40  ;;  %4034 = vpow2.f32 %v3360_v3  ;;  %3706 = vmatprep.mubr.msk.bf16.mxu0 %vm595_vm0, %v2139_v37  ;;  %v3661_v47 = vpop.f32.mrf.mxu1  ;;  %v2020_v24 = vsel %vm595_vm0, %v1898_v15, 0.0 }
 0x211   : > { %v4011_v58 = vpop.eup %4010  ;;  %4036 = vpow2.f32 %v3365_v41  ;;  %v3363_v23 = vmul.f32 -1.442695, %v1423_v43  ;;  %v1434_v49 = vadd.f32 %v3661_v47, %v4552_v11  ;;  %2018 = vadd.xlane.f32.xlu1 %v2017_v48  ;;  %3707 = vmatmul.mubr.msk.bf16.gmra.mxu0 %vm595_vm0, %v2140_v45  ;;  %v2035_v3 = vsel %vm595_vm0, %v1903_v19, 0.0 }
 0x212   : > { %v4706_v51 = vpop.eup %4012  ;;  %4038 = vrcp.f32 %v1719_v44  ;;  %v1717_v53 = vadd.f32 1.0, %v4011_v58  ;;  %v1425_v54 = vpop.f32.mrf.mxu1  ;;  %v1901_v36 = vmul.f32 %v4700_v46, %v4700_v46 }
 0x213   : > { %v4015_v59 = vpop.eup %4014  ;;  %4040 = vpow2.f32 %v3363_v23  ;;  %v3366_v13 = vmul.f32 -1.442695, %v1434_v49  ;;  %v1426_v60 = vadd.f32 %v4552_v11, %v1425_v54  ;;  %2006 = vadd.xlane.f32.xlu0 %v2005_v56  ;;  %v2142_v14 = vpack.c.bf16 %v4706_v51, %v4693_v25 }
 0x214   : > { %v4017_v34 = vpop.eup %4016  ;;  %4042 = vrcp.f32 %v1717_v53  ;;  %v1720_v61 = vadd.f32 1.0, %v4015_v59  ;;  %v3664_v6 = vpop.f32.mrf.mxu1  ;;  %v1904_v45 = vmul.f32 %v4706_v51, %v4706_v51  ;;  %v2029_v23 = vsel %vm595_vm0, %v1901_v36, 0.0 }
 0x215   : > { %v4019_v63 = vpop.eup %4018  ;;  %4044 = vpow2.f32 %v3366_v13  ;;  %v3364_v0 = vmul.f32 -1.442695, %v1426_v60  ;;  %v1447_v1 = vadd.f32 %v3664_v6, %v4552_v11  ;;  %2027 = vadd.xlane.f32.xlu1 %v2026_v62  ;;  %v2141_v52 = vpack.c.bf16 %v4017_v34, %v4700_v46 }
 0x216   : > { %v4715_v4 = vpop.eup %4020  ;;  %4046 = vrcp.f32 %v1720_v61  ;;  %v1718_v5 = vadd.f32 1.0, %v4019_v63  ;;  %v1438_v7 = vpop.f32.mrf.mxu1  ;;  %v1902_v9 = vmul.f32 %v4017_v34, %v4017_v34  ;;  %v2038_v59 = vsel %vm595_vm0, %v1904_v45, 0.0 }
 0x217   : > { %v4023_v55 = vpop.eup %4022  ;;  %4048 = vpow2.f32 %v3364_v0  ;;  %v3369_v10 = vmul.f32 -1.442695, %v1447_v1  ;;  %v1439_v12 = vadd.f32 %v4552_v11, %v1438_v7  ;;  %2015 = vadd.xlane.f32.xlu0 %v2014_v8  ;;  %3710 = vmatprep.mubr.msk.bf16.mxu0 %vm595_vm0, %v2141_v52  ;;  %v4730_v11 = vld [vmem:[%s5227_s4] ss:$0 sm:$0xff]  ;;  %v1907_v0 = vmul.f32 %v4715_v4, %v4715_v4 }
 0x218   : > { %v4722_v16 = vpop.eup %4024  ;;  %4050 = vrcp.f32 %v1718_v5  ;;  %v1723_v17 = vadd.f32 1.0, %v4023_v55  ;;  %v3665_v18 = vpop.f32.mrf.mxu1  ;;  %v2032_v28 = vsel %vm595_vm0, %v1902_v9, 0.0 }
 0x219   : > { %v4027_v21 = vpop.eup %4026  ;;  %4052 = vpow2.f32 %v3369_v10  ;;  %v3367_v33 = vmul.f32 -1.442695, %v1439_v12  ;;  %v1450_v2 = vadd.f32 %v4730_v11, %v3665_v18  ;;  %2021 = vadd.xlane.f32.xlu1 %v2020_v24  ;;  %3711 = vmatmul.mubr.msk.bf16.gmra.mxu0 %vm595_vm0, %v2142_v14  ;;  %v1905_v12 = vmul.f32 %v4722_v16, %v4722_v16 }
 0x21a   : > { %v4734_v22 = vpop.eup %4028  ;;  %4054 = vrcp.f32 %v1723_v17  ;;  %v1721_v26 = vadd.f32 1.0, %v4027_v21  ;;  %v1441_v27 = vpop.f32.mrf.mxu1  ;;  %v2047_v21 = vsel %vm595_vm0, %v1907_v0, 0.0 }
 0x21b   : > { %v4031_v38 = vpop.eup %4030  ;;  %4056 = vpow2.f32 %v3367_v33  ;;  %v3370_v30 = vmul.f32 -1.442695, %v1450_v2  ;;  %v1442_v31 = vadd.f32 %v4730_v11, %v1441_v27  ;;  %2033 = vadd.xlane.f32.xlu0 %v2032_v28  ;;  %v2144_v43 = vpack.c.bf16 %v4734_v22, %v4715_v4 }
 0x21c   : > { %v4738_v32 = vpop.eup %4032  ;;  %4058 = vrcp.f32 %v1721_v26  ;;  %v1724_v50 = vadd.f32 1.0, %v4031_v38  ;;  %v3668_v35 = vpop.f32.mrf.mxu1 }
 0x21d   : > { %v4035_v25 = vpop.eup %4034  ;;  %4060 = vpow2.f32 %v3370_v30  ;;  %v3368_v20 = vmul.f32 -1.442695, %v1442_v31  ;;  %v1463_v29 = vadd.f32 %v4730_v11, %v3668_v35  ;;  %2036 = vadd.xlane.f32.xlu1 %v2035_v3  ;;  %v2143_v37 = vpack.c.bf16 %v4738_v32, %v4722_v16 }
 0x21e   : > { %v4037_v39 = vpop.eup %4036  ;;  %4062 = vrcp.f32 %v1724_v50  ;;  %v1722_v40 = vadd.f32 1.0, %v4035_v25  ;;  %v1454_v41 = vpop.f32.mrf.mxu1  ;;  %v2041_v31 = vsel %vm595_vm0, %v1905_v12, 0.0 }
 0x21f   : > { %v4750_v46 = vpop.eup %4038  ;;  %v1727_v44 = vadd.f32 1.0, %v4037_v39  ;;  %4064 = vpow2.f32 %v3368_v20  ;;  %v3373_v47 = vmul.f32 -1.442695, %v1463_v29  ;;  %v1455_v48 = vadd.f32 %v4730_v11, %v1454_v41  ;;  %3714 = vmatprep.mubr.msk.bf16.mxu0 %vm595_vm0, %v2143_v37 }
 0x220   : > { %v4041_v42 = vpop.eup %4040  ;;  %4066 = vrcp.f32 %v1722_v40  ;;  %v3669_v58 = vpop.f32.mrf.mxu1  ;;  %v1906_v37 = vmul.f32 %v4738_v32, %v4738_v32 }
 0x221   : > { %v4043_v49 = vpop.eup %4042  ;;  %4068 = vrcp.f32 %v1727_v44  ;;  %v1725_v53 = vadd.f32 1.0, %v4041_v42  ;;  %v3371_v54 = vmul.f32 -1.442695, %v1455_v48  ;;  %v1466_v51 = vadd.f32 %v4730_v11, %v3669_v58  ;;  %2030 = vadd.xlane.f32.xlu1 %v2029_v23  ;;  %3715 = vmatmul.mubr.msk.bf16.gmra.mxu0 %vm595_vm0, %v2144_v43 }
 0x222   : > { %v4045_v56 = vpop.eup %4044  ;;  %4070 = vpow2.f32 %v3373_v47  ;;  %v1457_v57 = vpop.f32.mrf.mxu1  ;;  %v1909_v13 = vmul.f32 %v4043_v49, %v4043_v49  ;;  %v2044_v32 = vsel %vm595_vm0, %v1906_v37, 0.0  ;;  %v1911_v58 = vmul.f32 %v4750_v46, %v4750_v46 }
 0x223   : > { %v4047_v60 = vpop.eup %4046  ;;  %4072 = vrcp.f32 %v1725_v53  ;;  %v1728_v34 = vadd.f32 1.0, %v4045_v56  ;;  %v3374_v61 = vmul.f32 -1.442695, %v1466_v51  ;;  %v1458_v6 = vadd.f32 %v4730_v11, %v1457_v57 }
 0x224   : > { %v4049_v62 = vpop.eup %4048  ;;  %4074 = vpow2.f32 %v3371_v54  ;;  %v3672_v15 = vpop.f32.mrf.mxu1  ;;  %v2053_v63 = vsel %vm595_vm0, %v1909_v13, 0.0  ;;  %v1912_v1 = vmul.f32 %v4047_v60, %v4047_v60  ;;  %v2146_v18 = vpack.c.bf16 %v4047_v60, %v4750_v46 }
 0x225   : > { %v4762_v52 = vpop.eup %4050  ;;  %4076 = vrcp.f32 %v1728_v34  ;;  %v1726_v5 = vadd.f32 1.0, %v4049_v62  ;;  %v3372_v7 = vmul.f32 -1.442695, %v1458_v6  ;;  %v1479_v8 = vadd.f32 %v4730_v11, %v3672_v15  ;;  %2039 = vadd.xlane.f32.xlu1 %v2038_v59  ;;  %2054 = vadd.xlane.f32.xlu0 %v2053_v63 }
 0x226   : > { %v4053_v9 = vpop.eup %4052  ;;  %4078 = vpow2.f32 %v3374_v61  ;;  %v1470_v55 = vpop.f32.mrf.mxu1  ;;  %v2145_v10 = vpack.c.bf16 %v4762_v52, %v4043_v49  ;;  %v2062_v28 = vsel %vm595_vm0, %v1912_v1, 0.0  ;;  %v2059_v13 = vsel %vm595_vm0, %v1911_v58, 0.0 }
 0x227   : > { %v4055_v14 = vpop.eup %4054  ;;  %4080 = vrcp.f32 %v1726_v5  ;;  %v3377_v4 = vmul.f32 -1.442695, %v1479_v8  ;;  %v1471_v17 = vadd.f32 %v4730_v11, %v1470_v55  ;;  %v1731_v20 = vadd.f32 1.0, %v4053_v9 }
 0x228   : > { %v4057_v24 = vpop.eup %4056  ;;  %4082 = vpow2.f32 %v3372_v7  ;;  %3718 = vmatprep.mubr.msk.bf16.mxu0 %vm595_vm0, %v2145_v10  ;;  %v3673_v19 = vpop.f32.mrf.mxu1  ;;  %v1915_v33 = vmul.f32 %v4055_v14, %v4055_v14  ;;  %v1910_v46 = vmul.f32 %v4762_v52, %v4762_v52  ;;  %v1908_v58 = vmul.f32 %v4734_v22, %v4734_v22 }
 0x229   : > { %v4059_v2 = vpop.eup %4058  ;;  %v1729_v26 = vadd.f32 1.0, %v4057_v24  ;;  %v3375_v27 = vmul.f32 -1.442695, %v1471_v17  ;;  %v1482_v16 = vadd.f32 %v4730_v11, %v3673_v19  ;;  %2048 = vadd.xlane.f32.xlu1 %v2047_v21  ;;  %3719 = vmatmul.mubr.msk.bf16.gmra.mxu0 %vm595_vm0, %v2146_v18  ;;  %4084 = vpow2.f32 %v3377_v4 }
 0x22a   : > { %v4061_v38 = vpop.eup %4060  ;;  %2063 = vadd.xlane.f32.xlu0 %v2062_v28  ;;  %v1473_v30 = vpop.f32.mrf.mxu1  ;;  %v2071_v29 = vsel %vm595_vm0, %v1915_v33, 0.0  ;;  %v1913_v43 = vmul.f32 %v4059_v2, %v4059_v2  ;;  %v2056_v1 = vsel %vm595_vm0, %v1910_v46, 0.0 }
 0x22b   : > { %v4776_v50 = vpop.eup %4062  ;;  %4086 = vrcp.f32 %v1729_v26  ;;  %v1732_v35 = vadd.f32 1.0, %v4061_v38  ;;  %v3378_v3 = vmul.f32 -1.442695, %v1482_v16  ;;  %v1474_v36 = vadd.f32 %v4730_v11, %v1473_v30 }
 0x22c   : > { %v4065_v25 = vpop.eup %4064  ;;  %4088 = vpow2.f32 %v3375_v27  ;;  %v2148_v11 = vpack.c.bf16 %v4776_v50, %v4055_v14  ;;  %v2065_v49 = vsel %vm595_vm0, %v1913_v43, 0.0 }
 0x22d   : > { %v4067_v39 = vpop.eup %4066  ;;  %4090 = vrcp.f32 %v1732_v35  ;;  %v1730_v40 = vadd.f32 1.0, %v4065_v25  ;;  %v3376_v41 = vmul.f32 -1.442695, %v1474_v36  ;;  %2042 = vadd.xlane.f32.xlu1 %v2041_v31 }
 0x22e   : > { %v4069_v45 = vpop.eup %4068  ;;  %4092 = vpow2.f32 %v3378_v3  ;;  %2072 = vadd.xlane.f32.xlu0 %v2071_v29  ;;  %v2147_v44 = vpack.c.bf16 %v4067_v39, %v4059_v2  ;;  %v1914_v53 = vmul.f32 %v4067_v39, %v4067_v39 }
 0x22f   : > { %v4071_v47 = vpop.eup %4070  ;;  %4094 = vrcp.f32 %v1730_v40  ;;  %v1919_v6 = vmul.f32 %v4069_v45, %v4069_v45 }
 0x230   : > { %v4073_v48 = vpop.eup %4072  ;;  %v1735_v42 = vadd.f32 1.0, %v4071_v47  ;;  %4096 = vpow2.f32 %v3376_v41  ;;  %3722 = vmatprep.mubr.msk.bf16.mxu0 %vm595_vm0, %v2147_v44  ;;  %v2068_v34 = vsel %vm595_vm0, %v1914_v53, 0.0 }
 0x231   : > { %v4075_v23 = vpop.eup %4074  ;;  %4098 = vrcp.f32 %v1731_v20  ;;  %2045 = vadd.xlane.f32.xlu1 %v2044_v32  ;;  %3723 = vmatmul.mubr.msk.bf16.gmra.mxu0 %vm595_vm0, %v2148_v11  ;;  %v2083_v8 = vsel %vm595_vm0, %v1919_v6, 0.0  ;;  %v1917_v9 = vmul.f32 %v4073_v48, %v4073_v48 }
 0x232   : > { %v4077_v54 = vpop.eup %4076  ;;  %4100 = vrcp.f32 %v1735_v42  ;;  %2066 = vadd.xlane.f32.xlu0 %v2065_v49  ;;  %v1733_v56 = vadd.f32 1.0, %v4075_v23 }
 0x233   : > { %v4079_v51 = vpop.eup %4078  ;;  %v2150_v63 = vpack.c.bf16 %v4077_v54, %v4069_v45  ;;  %v2077_v24 = vsel %vm595_vm0, %v1917_v9, 0.0  ;;  %v1920_v21 = vmul.f32 %v4077_v54, %v4077_v54  ;;  %v2988_v9 = vld [vmem:[%s5230_s7 + $0x78] sm:$0xff] }
 0x234   : > { %v4081_v57 = vpop.eup %4080  ;;  %v1736_v59 = vadd.f32 1.0, %v4079_v51  ;;  %v2050_v51 = vsel %vm595_vm0, %v1908_v58, 0.0 }
 0x235   : > { %v4083_v60 = vpop.eup %4082  ;;  %2060 = vadd.xlane.f32.xlu1 %v2059_v13  ;;  %v2149_v61 = vpack.c.bf16 %v4081_v57, %v4073_v48  ;;  %v1918_v5 = vmul.f32 %v4081_v57, %v4081_v57  ;;  %v2086_v28 = vsel %vm595_vm0, %v1920_v21, 0.0  ;;  %v2985_v21 = vld [vmem:[%s5230_s7 + $0x60] sm:$0xff] }
 0x236   : > { %4102 = vrcp.f32 %v1736_v59  ;;  %v1734_v62 = vadd.f32 1.0, %v4083_v60  ;;  %2069 = vadd.xlane.f32.xlu0 %v2068_v34  ;;  %v4085_v15 = vpop.eup %4084 }
 0x237   : > { %4104 = vrcp.f32 %v1733_v56  ;;  %3726 = vmatprep.mubr.msk.bf16.mxu0 %vm595_vm0, %v2149_v61  ;;  %v1739_v7 = vadd.f32 1.0, %v4085_v15  ;;  %v2080_v17 = vsel %vm595_vm0, %v1918_v5, 0.0  ;;  %v1916_v56 = vmul.f32 %v4776_v50, %v4776_v50 }
 0x238   : > { %v4087_v0 = vpop.eup %4086  ;;  %4106 = vrcp.f32 %v1734_v62 }
 0x239   : > { %v4089_v52 = vpop.eup %4088  ;;  %2057 = vadd.xlane.f32.xlu1 %v2056_v1  ;;  %3727 = vmatmul.mubr.msk.bf16.gmra.mxu0 %vm595_vm0, %v2150_v63  ;;  %4108 = vrcp.f32 %v1739_v7  ;;  %v1921_v38 = vmul.f32 %v4087_v0, %v4087_v0  ;;  %v2074_v59 = vsel %vm595_vm0, %v1916_v56, 0.0 }
 0x23a   : > { %v4797_v55 = vpop.eup %4090  ;;  %v1737_v10 = vadd.f32 1.0, %v4089_v52  ;;  %2084 = vadd.xlane.f32.xlu0 %v2083_v8 }
 0x23b   : > { %v4093_v12 = vpop.eup %4092  ;;  %v2089_v25 = vsel %vm595_vm0, %v1921_v38, 0.0  ;;  %v1924_v13 = vmul.f32 %v4797_v55, %v4797_v55 }
 0x23c   : > { %v4095_v14 = vpop.eup %4094  ;;  %v1740_v4 = vadd.f32 1.0, %v4093_v12  ;;  %4110 = vrcp.f32 %v1737_v10  ;;  %v2987_v10 = vld [vmem:[%s5230_s7 + $0x70] sm:$0xff] }
 0x23d   : > { %v4097_v18 = vpop.eup %4096  ;;  %2081 = vadd.xlane.f32.xlu1 %v2080_v17  ;;  %v2151_v19 = vpack.c.bf16 %v4095_v14, %v4087_v0  ;;  %v1922_v20 = vmul.f32 %v4095_v14, %v4095_v14  ;;  %v2098_v34 = vsel %vm595_vm0, %v1924_v13, 0.0  ;;  %v2986_v14 = vld [vmem:[%s5230_s7 + $0x68] sm:$0xff] }
 0x23e   : > { %v4099_v33 = vpop.eup %4098  ;;  %v1738_v2 = vadd.f32 1.0, %v4097_v18  ;;  %2078 = vadd.xlane.f32.xlu0 %v2077_v24  ;;  %4112 = vrcp.f32 %v1740_v4 }
 0x23f   : > { %v4101_v26 = vpop.eup %4100  ;;  %3730 = vmatprep.mubr.msk.bf16.mxu0 %vm595_vm0, %v2151_v19  ;;  %v2152_v27 = vpack.c.bf16 %v4797_v55, %v4099_v33  ;;  %v1923_v31 = vmul.f32 %v4099_v33, %v4099_v33  ;;  %v2092_v41 = vsel %vm595_vm0, %v1922_v20, 0.0  ;;  %v4211_v55 = vmov 0.0   ;;  %v2984_v33 = vld [vmem:[%s5230_s7 + $0x58] sm:$0xff] }
 0x240   : > { %4114 = vrcp.f32 %v1738_v2  ;;  %v1927_v16 = vmul.f32 %v4101_v26, %v4101_v26  ;;  %3742 = vmatprep.subr.mxu1 %v4211_v55  ;;  %3774 = vmatprep.mubr.msk.f32.mxu1 %vm4212_vm1, %v4211_v55 }
 0x241   : > { %3731 = vmatmul.mubr.msk.bf16.gmra.mxu0 %vm595_vm0, %v2152_v27  ;;  %v2095_v29 = vsel %vm595_vm0, %v1923_v31, 0.0  ;;  %3743 = vmatpush3.msra.mxu1 %v2988_v9  ;;  %v2982_v31 = vld [vmem:[%s5230_s7 + $0x48] sm:$0xff] }
 0x242   : > { %2087 = vadd.xlane.f32.xlu0 %v2086_v28  ;;  %v2107_v30 = vsel %vm595_vm0, %v1927_v16, 0.0  ;;  %3744 = vmatprep.subr.mxu1 %v4211_v55 }
 0x243   : > { %v4103_v35 = vpop.eup %4102  ;;  %2108 = vadd.xlane.f32.xlu1 %v2107_v30  ;;  %3745 = vmatpush3.msra.mxu1 %v2987_v10  ;;  %v2983_v30 = vld [vmem:[%s5230_s7 + $0x50] sm:$0xff] }
 0x244   : > { %v4105_v3 = vpop.eup %4104  ;;  %v1928_v39 = vmul.f32 %v4103_v35, %v4103_v35  ;;  %v2154_v40 = vpack.c.bf16 %v4103_v35, %v4101_v26  ;;  %3746 = vmatprep.subr.mxu1 %v4211_v55 }
 0x245   : > { %v4107_v36 = vpop.eup %4106  ;;  %v1925_v43 = vmul.f32 %v4105_v3, %v4105_v3  ;;  %3747 = vmatpush3.msra.mxu1 %v2986_v14 }
 0x246   : > { %2090 = vadd.xlane.f32.xlu0 %v2089_v25  ;;  %v2153_v37 = vpack.c.bf16 %v4107_v36, %v4105_v3  ;;  %v4109_v45 = vpop.eup %4108  ;;  %v2110_v44 = vsel %vm595_vm0, %v1928_v39, 0.0  ;;  %v1926_v47 = vmul.f32 %v4107_v36, %v4107_v36  ;;  %3748 = vmatprep.subr.mxu1 %v4211_v55 }
 0x247   : > { %2096 = vadd.xlane.f32.xlu1 %v2095_v29  ;;  %v2101_v32 = vsel %vm595_vm0, %v1925_v43, 0.0  ;;  %v1931_v53 = vmul.f32 %v4109_v45, %v4109_v45  ;;  %3749 = vmatpush3.msra.mxu1 %v2985_v21 }
 0x248   : > { %3734 = vmatprep.mubr.msk.bf16.mxu0 %vm595_vm0, %v2153_v37  ;;  %v2104_v23 = vsel %vm595_vm0, %v1926_v47, 0.0  ;;  %3750 = vmatprep.subr.mxu1 %v4211_v55  ;;  %v4910_v47 = vld [vmem:[%s5229_s6] ss:$0 sm:$0xff] }
 0x249   : > { %3735 = vmatmul.mubr.msk.bf16.gmra.mxu0 %vm595_vm0, %v2154_v40  ;;  %v4111_v11 = vpop.eup %4110  ;;  %v2119_v57 = vsel %vm595_vm0, %v1931_v53, 0.0  ;;  %3751 = vmatpush3.msra.mxu1 %v2984_v33 }
 0x24a   : > { %2093 = vadd.xlane.f32.xlu0 %v2092_v41  ;;  %v1929_v22 = vmul.f32 %v4111_v11, %v4111_v11  ;;  %3752 = vmatprep.subr.mxu1 %v4211_v55 }
 0x24b   : > { %2111 = vadd.xlane.f32.xlu1 %v2110_v44  ;;  %v4113_v48 = vpop.eup %4112  ;;  %3753 = vmatpush3.msra.mxu1 %v2983_v30 }
 0x24c   : > { %v2156_v54 = vpack.c.bf16 %v4113_v48, %v4109_v45  ;;  %v2113_v46 = vsel %vm595_vm0, %v1929_v22, 0.0  ;;  %v1932_v61 = vmul.f32 %v4113_v48, %v4113_v48  ;;  %3754 = vmatprep.subr.mxu1 %v4211_v55 }
 0x24d   : > { %v4115_v42 = vpop.eup %4114  ;;  %3755 = vmatpush3.msra.mxu1 %v2982_v31 }
 0x24e   : > { %2102 = vadd.xlane.f32.xlu0 %v2101_v32  ;;  %v2155_v49 = vpack.c.bf16 %v4115_v42, %v4111_v11  ;;  %v1930_v60 = vmul.f32 %v4115_v42, %v4115_v42  ;;  %v2122_v62 = vsel %vm595_vm0, %v1932_v61, 0.0  ;;  %3756 = vmatprep.subr.mxu1 %v4211_v55 }
 0x24f   : > { %2105 = vadd.xlane.f32.xlu1 %v2104_v23 }
 0x250   : > { %3738 = vmatprep.mubr.msk.bf16.mxu0 %vm595_vm0, %v2155_v49  ;;  %v2116_v50 = vsel %vm595_vm0, %v1930_v60, 0.0  ;;  %v2980_v60 = vld [vmem:[%s5230_s7 + $0x38] sm:$0xff] }
 0x251   : > { %3739 = vmatmul.mubr.msk.bf16.gmra.mxu0 %vm595_vm0, %v2156_v54 }
 0x252   : > { %2051 = vadd.xlane.f32.xlu0 %v2050_v51 }
 0x253   : > { %2120 = vadd.xlane.f32.xlu1 %v2119_v57 }
 0x256   : > { %2075 = vadd.xlane.f32.xlu0 %v2074_v59 }
 0x257   : > { %2114 = vadd.xlane.f32.xlu1 %v2113_v46  ;;  %v2981_v46 = vld [vmem:[%s5230_s7 + $0x40] sm:$0xff] }
 0x258   : > { %3757 = vmatpush3.msra.mxu1 %v2981_v46 }
 0x259   : > { %3758 = vmatprep.subr.mxu1 %v4211_v55 }
 0x25a   : > { %2099 = vadd.xlane.f32.xlu0 %v2098_v34  ;;  %3759 = vmatpush3.msra.mxu1 %v2980_v60 }
 0x25b   : > { %2117 = vadd.xlane.f32.xlu1 %v2116_v50  ;;  %v4828_v6 = vpop.xlane.xlu0 %1940  ;;  %3760 = vmatprep.subr.mxu1 %v4211_v55 }
 0x25f   : > { %2123 = vadd.xlane.f32.xlu1 %v2122_v62  ;;  %v1935_v15 = vpop.xlane.xlu0 %1934  ;;  %v4833_v0 = vpop.xlane.xlu1 %1943 }
 0x263   : > { %v4831_v63 = vpop.xlane.xlu0 %1937  ;;  %v4837_v5 = vpop.xlane.xlu1 %1952 }
 0x267   : > { %v4835_v1 = vpop.xlane.xlu0 %1946  ;;  %v4841_v7 = vpop.xlane.xlu1 %1955 }
 0x26b   : > { %v4858_v4 = vpop.xlane.xlu1 %1949 }
 0x26f   : > { %v4864_v18 = vpop.xlane.xlu1 %1964 }
 0x270   : > { %v4839_v52 = vpop.xlane.xlu0 %1967 }
 0x273   : > { %v4876_v2 = vpop.xlane.xlu1 %1958 }
 0x274   : > { %v4843_v8 = vpop.xlane.xlu0 %1976 }
 0x277   : > { %v4882_v27 = vpop.xlane.xlu1 %1961 }
 0x278   : > { %v4852_v12 = vpop.xlane.xlu0 %1979 }
 0x27b   : > { %v4886_v28 = vpop.xlane.xlu1 %1970 }
 0x27c   : > { %v4861_v17 = vpop.xlane.xlu0 %1973 }
 0x280   : > { %v4866_v24 = vpop.xlane.xlu0 %1988 }
 0x282   : > { %v4896_v35 = vpop.xlane.xlu1 %1985 }
 0x284   : > { %v4868_v19 = vpop.xlane.xlu0 %1982 }
 0x288   : > { %v4880_v26 = vpop.xlane.xlu0 %1991 }
 0x28c   : > { %v4884_v16 = vpop.xlane.xlu0 %2000  ;;  %v4900_v36 = vpop.xlane.xlu1 %2012 }
 0x290   : > { %v4888_v38 = vpop.xlane.xlu0 %1994 }
 0x292   : > { %v4905_v41 = vpop.xlane.xlu1 %2009 }
 0x294   : > { %v4902_v20 = vpop.xlane.xlu0 %2003 }
 0x296   : > { %v4917_v54 = vpop.xlane.xlu1 %2024 }
 0x298   : > { %v4913_v42 = vpop.xlane.xlu0 %1997 }
 0x299   : > { %v3680_v3 = vpop.f32.mrf.mxu0 }
 0x29a   : > { %v2560_v25 = vmul.f32 2.0, %v3680_v3  ;;  %v4936_v21 = vpop.xlane.xlu1 %2018 }
 0x29b   : > { %v2303_v29 = vpop.f32.mrf.mxu0 }
 0x29c   : > { %v2624_v37 = vsub.f32 %v4828_v6, %v2560_v25  ;;  %v2558_v39 = vmul.f32 2.0, %v2303_v29  ;;  %v4930_v62 = vpop.xlane.xlu0 %2006 }
 0x29d   : > { %v3681_v40 = vpop.f32.mrf.mxu0 }
 0x29e   : > { %v2622_v43 = vsub.f32 %v1935_v15, %v2558_v39  ;;  %v2561_v45 = vmul.f32 2.0, %v3681_v40  ;;  %v2695_v51 = vadd.f32 %v4910_v47, %v2624_v37 }
 0x29f   : > { %v2306_v44 = vpop.f32.mrf.mxu0 }
 0x2a0   : > { %v2625_v11 = vsub.f32 %v4833_v0, %v2561_v45  ;;  %v2559_v48 = vmul.f32 2.0, %v2306_v44  ;;  %v2693_v32 = vadd.f32 %v4910_v47, %v2622_v43  ;;  %v4940_v40 = vpop.xlane.xlu0 %2015 }
 0x2a1   : > { %v3684_v58 = vpop.f32.mrf.mxu0 }
 0x2a2   : > { %v2623_v23 = vsub.f32 %v4831_v63, %v2559_v48  ;;  %v2564_v49 = vmul.f32 2.0, %v3684_v58  ;;  %v2757_v59 = vmax.f32 %v2693_v32, 0.0  ;;  %v2696_v34 = vadd.f32 %v4910_v47, %v2625_v11 }
 0x2a3   : > { %v2319_v53 = vpop.f32.mrf.mxu0  ;;  %v2759_v63 = vmax.f32 %v2695_v51, 0.0 }
 0x2a4   : > { %v2694_v56 = vadd.f32 %v4910_v47, %v2623_v23  ;;  %v2628_v57 = vsub.f32 %v4837_v5, %v2564_v49  ;;  %v2562_v22 = vmul.f32 2.0, %v2319_v53  ;;  %v4946_v23 = vpop.xlane.xlu1 %2027 }
 0x2a5   : > { %v3685_v13 = vpop.f32.mrf.mxu0 }
 0x2a6   : > { %v2758_v50 = vmax.f32 %v2694_v56, 0.0  ;;  %v2626_v61 = vsub.f32 %v4835_v1, %v2562_v22  ;;  %v2565_v6 = vmul.f32 2.0, %v3685_v13  ;;  %v2760_v1 = vmax.f32 %v2696_v34, 0.0  ;;  %v4951_v13 = vpop.xlane.xlu0 %2033 }
 0x2a7   : > { %v2322_v15 = vpop.f32.mrf.mxu0 }
 0x2a8   : > { %v2821_v0 = vmin.f32 %v2757_v59, %v2758_v50  ;;  %v2697_v5 = vadd.f32 %v4910_v47, %v2626_v61  ;;  %v2629_v9 = vsub.f32 %v4841_v7, %v2565_v6  ;;  %v2563_v10 = vmul.f32 2.0, %v2322_v15 }
 0x2a9   : > { %v3688_v14 = vpop.f32.mrf.mxu0  ;;  %v2699_v7 = vadd.f32 %v4910_v47, %v2628_v57 }
 0x2aa   : > { %v2822_v33 = vmin.f32 %v2821_v0, %v2759_v63  ;;  %v2568_v30 = vmul.f32 2.0, %v3688_v14  ;;  %v2627_v31 = vsub.f32 %v4858_v4, %v2563_v10  ;;  %v2761_v25 = vmax.f32 %v2697_v5, 0.0  ;;  %v2978_v0 = vld [vmem:[%s5230_s7 + $0x28] sm:$0xff]  ;;  %v4962_v5 = vpop.xlane.xlu1 %2021 }
 0x2ab   : > { %v2335_v3 = vpop.f32.mrf.mxu0  ;;  %v2700_v32 = vadd.f32 %v4910_v47, %v2629_v9  ;;  %v2763_v53 = vmax.f32 %v2699_v7, 0.0 }
 0x2ac   : > { %v2823_v29 = vmin.f32 %v2822_v33, %v2760_v1  ;;  %v2632_v37 = vsub.f32 %v4864_v18, %v2568_v30  ;;  %v2566_v39 = vmul.f32 2.0, %v2335_v3  ;;  %v2698_v43 = vadd.f32 %v4910_v47, %v2627_v31  ;;  %v2977_v31 = vld [vmem:[%s5230_s7 + $0x20] sm:$0xff] }
 0x2ad   : > { %v3689_v45 = vpop.f32.mrf.mxu0 }
 0x2ae   : > { %v2824_v44 = vmin.f32 %v2823_v29, %v2761_v25  ;;  %v2630_v11 = vsub.f32 %v4876_v2, %v2566_v39  ;;  %v2569_v48 = vmul.f32 2.0, %v3689_v45  ;;  %v2762_v4 = vmax.f32 %v2698_v43, 0.0  ;;  %v4967_v33 = vpop.xlane.xlu0 %2054  ;;  %v2976_v43 = vld [vmem:[%s5230_s7 + $0x18] sm:$0xff] }
 0x2af   : > { %v2338_v58 = vpop.f32.mrf.mxu0  ;;  %v2764_v2 = vmax.f32 %v2700_v32, 0.0  ;;  %v2703_v34 = vadd.f32 %v4910_v47, %v2632_v37 }
 0x2b0   : > { %v2633_v18 = vsub.f32 %v4839_v52, %v2569_v48  ;;  %v2567_v49 = vmul.f32 2.0, %v2338_v58  ;;  %v2825_v51 = vmin.f32 %v2824_v44, %v2762_v4  ;;  %v2701_v56 = vadd.f32 %v4910_v47, %v2630_v11  ;;  %v4984_v58 = vpop.xlane.xlu1 %2036 }
 0x2b1   : > { %v3692_v57 = vpop.f32.mrf.mxu0  ;;  %v2767_v3 = vmax.f32 %v2703_v34, 0.0 }
 0x2b2   : > { %v2631_v22 = vsub.f32 %v4882_v27, %v2567_v49  ;;  %v2572_v59 = vmul.f32 2.0, %v3692_v57  ;;  %v2826_v46 = vmin.f32 %v2825_v51, %v2763_v53  ;;  %v2765_v15 = vmax.f32 %v2701_v56, 0.0  ;;  %v2979_v27 = vld [vmem:[%s5230_s7 + $0x30] sm:$0xff] }
 0x2b3   : > { %v2351_v60 = vpop.f32.mrf.mxu0  ;;  %v2704_v9 = vadd.f32 %v4910_v47, %v2633_v18  ;;  %3761 = vmatpush3.msra.mxu1 %v2979_v27  ;;  %v4988_v57 = vpop.xlane.xlu0 %2063 }
 0x2b4   : > { %v2702_v50 = vadd.f32 %v4910_v47, %v2631_v22  ;;  %v2636_v52 = vsub.f32 %v4843_v8, %v2572_v59  ;;  %v2570_v61 = vmul.f32 2.0, %v2351_v60  ;;  %v2827_v6 = vmin.f32 %v2826_v46, %v2764_v2  ;;  %3762 = vmatprep.subr.mxu1 %v4211_v55  ;;  %v2974_v59 = vld [vmem:[%s5230_s7 + $0x8] sm:$0xff] }
 0x2b5   : > { %v3693_v63 = vpop.f32.mrf.mxu0  ;;  %3763 = vmatpush3.msra.mxu1 %v2978_v0  ;;  %v2768_v45 = vmax.f32 %v2704_v9, 0.0  ;;  %v5004_v9 = vpop.xlane.xlu1 %2030 }
 0x2b6   : > { %v2766_v10 = vmax.f32 %v2702_v50, 0.0  ;;  %v2634_v14 = vsub.f32 %v4886_v28, %v2570_v61  ;;  %v2573_v8 = vmul.f32 2.0, %v3693_v63  ;;  %v2828_v1 = vrot.slane %v2827_v6, 4  ;;  %3764 = vmatprep.subr.mxu1 %v4211_v55  ;;  %v2973_v61 = vld [vmem:[%s5230_s7] sm:$0xff] }
 0x2b7   : > { %v2354_v30 = vpop.f32.mrf.mxu0  ;;  %3765 = vmatpush3.msra.mxu1 %v2977_v31  ;;  %v2707_v56 = vadd.f32 %v4910_v47, %v2636_v52 }
 0x2b8   : > { %v2834_v25 = vmin.f32 %v2765_v15, %v2766_v10  ;;  %v2705_v29 = vadd.f32 %v4910_v47, %v2634_v14  ;;  %v2637_v28 = vsub.f32 %v4852_v12, %v2573_v8  ;;  %v2829_v37 = vmin.f32 %v2827_v6, %v2828_v1  ;;  %3766 = vmatprep.subr.mxu1 %v4211_v55  ;;  %v2975_v12 = vld [vmem:[%s5230_s7 + $0x10] sm:$0xff] }
 0x2b9   : > { %v2571_v39 = vmul.f32 2.0, %v2354_v30  ;;  %v3696_v7 = vpop.f32.mrf.mxu0  ;;  %3767 = vmatpush3.msra.mxu1 %v2976_v43  ;;  %v2771_v63 = vmax.f32 %v2707_v56, 0.0  ;;  %v5007_v30 = vpop.xlane.xlu0 %2072 }
 0x2ba   : > { %v2835_v44 = vmin.f32 %v2834_v25, %v2767_v3  ;;  %v2576_v11 = vmul.f32 2.0, %v3696_v7  ;;  %v2830_v48 = vrot.slane %v2829_v37, 2  ;;  %v2769_v18 = vmax.f32 %v2705_v29, 0.0  ;;  %3768 = vmatprep.subr.mxu1 %v4211_v55 }
 0x2bb   : > { %v2635_v32 = vsub.f32 %v4861_v17, %v2571_v39  ;;  %v2367_v4 = vpop.f32.mrf.mxu0  ;;  %3769 = vmatpush3.msra.mxu1 %v2975_v12  ;;  %v2708_v34 = vadd.f32 %v4910_v47, %v2637_v28 }
 0x2bc   : > { %v2836_v49 = vmin.f32 %v2835_v44, %v2768_v45  ;;  %v2640_v53 = vsub.f32 %v4866_v24, %v2576_v11  ;;  %v2574_v51 = vmul.f32 2.0, %v2367_v4  ;;  %v2831_v24 = vmin.f32 %v2829_v37, %v2830_v48  ;;  %3770 = vmatprep.subr.mxu1 %v4211_v55 }
 0x2bd   : > { %v2706_v17 = vadd.f32 %v4910_v47, %v2635_v32  ;;  %v3697_v22 = vpop.f32.mrf.mxu0  ;;  %3771 = vmatpush3.msra.mxu1 %v2974_v59  ;;  %v2772_v1 = vmax.f32 %v2708_v34, 0.0  ;;  %v5016_v32 = vpop.xlane.xlu1 %2039 }
 0x2be   : > { %v2837_v2 = vmin.f32 %v2836_v49, %v2769_v18  ;;  %v2638_v46 = vsub.f32 %v4868_v19, %v2574_v51  ;;  %v2577_v60 = vmul.f32 2.0, %v3697_v22  ;;  %3772 = vmatprep.subr.mxu1 %v4211_v55  ;;  %v2832_v8 = vrot.slane %v2831_v24, 1 }
 0x2bf   : > { %v2770_v50 = vmax.f32 %v2706_v17, 0.0  ;;  %v2370_v52 = vpop.f32.mrf.mxu0  ;;  %3773 = vmatpush3.msra.mxu1 %v2973_v61  ;;  %v2711_v3 = vadd.f32 %v4910_v47, %v2640_v53  ;;  %v5020_v53 = vpop.xlane.xlu0 %2066 }
 0x2c0   : > { %v2641_v6 = vsub.f32 %v4880_v26, %v2577_v60  ;;  %v2575_v15 = vmul.f32 2.0, %v2370_v52  ;;  %v2709_v19 = vadd.f32 %v4910_v47, %v2638_v46  ;;  %v5014_v44 = vmin.f32 %v2831_v24, %v2832_v8 }
 0x2c1   : > { %v2838_v27 = vmin.f32 %v2837_v2, %v2770_v50  ;;  %v3700_v0 = vpop.f32.mrf.mxu0  ;;  %v2775_v4 = vmax.f32 %v2711_v3, 0.0 }
 0x2c2   : > { %v2639_v10 = vsub.f32 %v4896_v35, %v2575_v15  ;;  %v2580_v14 = vmul.f32 2.0, %v3700_v0  ;;  %v2773_v37 = vmax.f32 %v2709_v19, 0.0  ;;  %v2712_v35 = vadd.f32 %v4910_v47, %v2641_v6 }
 0x2c3   : > { %v2839_v26 = vmin.f32 %v2838_v27, %v2771_v63  ;;  %v2383_v31 = vpop.f32.mrf.mxu0  ;;  %v2933_v59 = vadd.f32 0.0001, %v5014_v44  ;;  %v5027_v63 = vpop.xlane.xlu1 %2048 }
 0x2c4   : > { %v2710_v25 = vadd.f32 %v4910_v47, %v2639_v10  ;;  %v2644_v29 = vsub.f32 %v4884_v16, %v2580_v14  ;;  %v2578_v28 = vmul.f32 2.0, %v2383_v31  ;;  %v2776_v17 = vmax.f32 %v2712_v35, 0.0  ;;  %v5030_v10 = vpop.xlane.xlu0 %2069 }
 0x2c5   : > { %v2840_v55 = vmin.f32 %v2839_v26, %v2772_v1  ;;  %v3701_v39 = vpop.f32.mrf.mxu0  ;;  %4116 = vrcp.f32 %v2933_v59 }
 0x2c6   : > { %v2774_v7 = vmax.f32 %v2710_v25, 0.0  ;;  %v2642_v43 = vsub.f32 %v4888_v38, %v2578_v28  ;;  %v2581_v45 = vmul.f32 2.0, %v3701_v39  ;;  %v2715_v61 = vadd.f32 %v4910_v47, %v2644_v29 }
 0x2c7   : > { %v2841_v11 = vrot.slane %v2840_v55, 4  ;;  %v2386_v48 = vpop.f32.mrf.mxu0 }
 0x2c8   : > { %v2847_v12 = vmin.f32 %v2773_v37, %v2774_v7  ;;  %v2713_v16 = vadd.f32 %v4910_v47, %v2642_v43  ;;  %v2645_v18 = vsub.f32 %v4902_v20, %v2581_v45  ;;  %v2579_v51 = vmul.f32 2.0, %v2386_v48  ;;  %v5036_v43 = vpop.xlane.xlu1 %2042 }
 0x2c9   : > { %v2842_v49 = vmin.f32 %v2840_v55, %v2841_v11  ;;  %v3704_v56 = vpop.f32.mrf.mxu0  ;;  %v2779_v31 = vmax.f32 %v2715_v61, 0.0 }
 0x2ca   : > { %v2848_v38 = vmin.f32 %v2847_v12, %v2775_v4  ;;  %v2584_v22 = vmul.f32 2.0, %v3704_v56  ;;  %v2643_v46 = vsub.f32 %v4913_v42, %v2579_v51  ;;  %v2777_v24 = vmax.f32 %v2713_v16, 0.0  ;;  %v5041_v12 = vpop.xlane.xlu0 %2084 }
 0x2cb   : > { %v2843_v2 = vrot.slane %v2842_v49, 2  ;;  %v2399_v60 = vpop.f32.mrf.mxu0  ;;  %v2716_v14 = vadd.f32 %v4910_v47, %v2645_v18 }
 0x2cc   : > { %v2849_v34 = vmin.f32 %v2848_v38, %v2776_v17  ;;  %v2648_v50 = vsub.f32 %v4900_v36, %v2584_v22  ;;  %v2582_v52 = vmul.f32 2.0, %v2399_v60  ;;  %v2714_v6 = vadd.f32 %v4910_v47, %v2643_v46 }
 0x2cd   : > { %v2844_v20 = vmin.f32 %v2842_v49, %v2843_v2  ;;  %v3705_v15 = vpop.f32.mrf.mxu0  ;;  %v2780_v39 = vmax.f32 %v2716_v14, 0.0 }
 0x2ce   : > { %v2850_v27 = vmin.f32 %v2849_v34, %v2777_v24  ;;  %v2646_v19 = vsub.f32 %v4930_v62, %v2582_v52  ;;  %v2585_v0 = vmul.f32 2.0, %v3705_v15  ;;  %v2778_v36 = vmax.f32 %v2714_v6, 0.0  ;;  %v5052_v6 = vpop.xlane.xlu0 %2078 }
 0x2cf   : > { %v2845_v42 = vrot.slane %v2844_v20, 1  ;;  %v2402_v8 = vpop.f32.mrf.mxu0  ;;  %v2719_v45 = vadd.f32 %v4910_v47, %v2648_v50  ;;  %v5049_v50 = vpop.xlane.xlu1 %2045 }
 0x2d0   : > { %v2583_v1 = vmul.f32 2.0, %v2402_v8  ;;  %v2851_v3 = vmin.f32 %v2850_v27, %v2778_v36  ;;  %v2717_v25 = vadd.f32 %v4910_v47, %v2646_v19  ;;  %v2649_v28 = vsub.f32 %v4940_v40, %v2585_v0 }
 0x2d1   : > { %v2846_v26 = vmin.f32 %v2844_v20, %v2845_v42  ;;  %v3708_v29 = vpop.f32.mrf.mxu0  ;;  %v2783_v59 = vmax.f32 %v2719_v45, 0.0 }
 0x2d2   : > { %v2647_v62 = vsub.f32 %v4905_v41, %v2583_v1  ;;  %v2588_v55 = vmul.f32 2.0, %v3708_v29  ;;  %v2852_v35 = vmin.f32 %v2851_v3, %v2779_v31  ;;  %v2781_v16 = vmax.f32 %v2717_v25, 0.0  ;;  %v4117_v27 = vpop.eup %4116  ;;  %v5060_v45 = vpop.xlane.xlu0 %2087 }
 0x2d3   : > { %v2934_v37 = vadd.f32 0.0001, %v2846_v26  ;;  %v2415_v7 = vpop.f32.mrf.mxu0  ;;  %v3090_v18 = vsel %vm2997_vm2, %v2846_v26, %v5014_v44  ;;  %v2720_v49 = vadd.f32 %v4910_v47, %v2649_v28 }
 0x2d4   : > { %v2718_v11 = vadd.f32 %v4910_v47, %v2647_v62  ;;  %v2652_v48 = vsub.f32 %v4917_v54, %v2588_v55  ;;  %v2586_v4 = vmul.f32 2.0, %v2415_v7  ;;  %v2853_v40 = vmin.f32 %v2852_v35, %v2780_v39  ;;  %v5058_v62 = vpop.xlane.xlu1 %2060 }
 0x2d5   : > { %v3709_v41 = vpop.f32.mrf.mxu0  ;;  %4118 = vrcp.f32 %v2934_v37  ;;  %v2784_v52 = vmax.f32 %v2720_v49, 0.0  ;;  %v2926_v35 = vadd.f32 1.0, %v2846_v26 }
 0x2d6   : > { %v2782_v51 = vmax.f32 %v2718_v11, 0.0  ;;  %v2650_v56 = vsub.f32 %v4936_v21, %v2586_v4  ;;  %v2854_v17 = vrot.slane %v2853_v40, 4  ;;  %v2589_v38 = vmul.f32 2.0, %v3709_v41 }
 0x2d7   : > { %v2418_v22 = vpop.f32.mrf.mxu0  ;;  %v2723_v19 = vadd.f32 %v4910_v47, %v2652_v48 }
 0x2d8   : > { %v2860_v54 = vmin.f32 %v2781_v16, %v2782_v51  ;;  %v2721_v2 = vadd.f32 %v4910_v47, %v2650_v56  ;;  %v2587_v46 = vmul.f32 2.0, %v2418_v22  ;;  %v2855_v60 = vmin.f32 %v2853_v40, %v2854_v17 }
 0x2d9   : > { %v2653_v24 = vsub.f32 %v4946_v23, %v2589_v38  ;;  %v3712_v34 = vpop.f32.mrf.mxu0  ;;  %v2925_v23 = vadd.f32 1.0, %v5014_v44  ;;  %v2787_v55 = vmax.f32 %v2723_v19, 0.0 }
 0x2da   : > { %v2861_v20 = vmin.f32 %v2860_v54, %v2783_v59  ;;  %v2651_v61 = vsub.f32 %v4962_v5, %v2587_v46  ;;  %v2856_v21 = vrot.slane %v2855_v60, 2  ;;  %v2785_v0 = vmax.f32 %v2721_v2, 0.0  ;;  %v2058_v59 = vpop.xlane.xlu1 %2057  ;;  %v5071_v2 = vpop.xlane.xlu0 %2090 }
 0x2db   : > { %v2431_v15 = vpop.f32.mrf.mxu0  ;;  %v2724_v31 = vadd.f32 %v4910_v47, %v2653_v24  ;;  %v2942_v5 = vmul.f32 %v4117_v27, %v2925_v23  ;;  %v2592_v4 = vmul.f32 2.0, %v3712_v34 }
 0x2dc   : > { %v2862_v42 = vmin.f32 %v2861_v20, %v2784_v52  ;;  %v2722_v14 = vadd.f32 %v4910_v47, %v2651_v61  ;;  %v2857_v36 = vmin.f32 %v2855_v60, %v2856_v21  ;;  %v2590_v29 = vmul.f32 2.0, %v2431_v15 }
 0x2dd   : > { %v3713_v8 = vpop.f32.mrf.mxu0  ;;  %v2788_v11 = vmax.f32 %v2724_v31, 0.0  ;;  %4120 = vlog2.f32 %v2942_v5 }
 0x2de   : > { %v2863_v1 = vmin.f32 %v2862_v42, %v2785_v0  ;;  %v2786_v3 = vmax.f32 %v2722_v14, 0.0  ;;  %v2858_v25 = vrot.slane %v2857_v36, 1  ;;  %v2654_v49 = vsub.f32 %v5004_v9, %v2590_v29  ;;  %v5076_v19 = vpop.xlane.xlu1 %2081  ;;  %v5078_v42 = vpop.xlane.xlu0 %2093 }
 0x2df   : > { %v2434_v28 = vpop.f32.mrf.mxu0  ;;  %v2593_v46 = vmul.f32 2.0, %v3713_v8 }
 0x2e0   : > { %v2864_v37 = vmin.f32 %v2863_v1, %v2786_v3  ;;  %v2591_v39 = vmul.f32 2.0, %v2434_v28  ;;  %v2859_v7 = vmin.f32 %v2857_v36, %v2858_v25  ;;  %v2725_v9 = vadd.f32 %v4910_v47, %v2654_v49 }
 0x2e1   : > { %v3716_v44 = vpop.f32.mrf.mxu0 }
 0x2e2   : > { %v2865_v48 = vmin.f32 %v2864_v37, %v2787_v55  ;;  %v2655_v40 = vsub.f32 %v4951_v13, %v2591_v39  ;;  %v4119_v16 = vpop.eup %4118  ;;  %v2935_v41 = vadd.f32 0.0001, %v2859_v7  ;;  %v5068_v22 = vsel %vm2999_vm3, %v2859_v7, %v3090_v18  ;;  %v5083_v55 = vpop.xlane.xlu1 %2108 }
 0x2e3   : > { %v2447_v51 = vpop.f32.mrf.mxu0  ;;  %v2944_v56 = vmul.f32 %v4119_v16, %v2926_v35  ;;  %v2656_v13 = vsub.f32 %v4984_v58, %v2592_v4  ;;  %v2789_v21 = vmax.f32 %v2725_v9, 0.0  ;;  %v2657_v18 = vsub.f32 %v5016_v32, %v2593_v46 }
 0x2e4   : > { %v2866_v17 = vmin.f32 %v2865_v48, %v2788_v11  ;;  %4122 = vrcp.f32 %v2935_v41  ;;  %v2726_v26 = vadd.f32 %v4910_v47, %v2655_v40  ;;  %v2594_v15 = vmul.f32 2.0, %v2447_v51 }
 0x2e5   : > { %v5065_v38 = vpop.f32.mrf.mxu0  ;;  %4124 = vlog2.f32 %v2944_v56  ;;  %v2727_v61 = vadd.f32 %v4910_v47, %v2656_v13  ;;  %v2728_v3 = vadd.f32 %v4910_v47, %v2657_v18  ;;  %v2927_v11 = vadd.f32 1.0, %v2859_v7 }
 0x2e6   : > { %v2867_v54 = vrot.slane %v2866_v17, 4  ;;  %v2790_v34 = vmax.f32 %v2726_v26, 0.0  ;;  %v2658_v5 = vsub.f32 %v5036_v43, %v2594_v15  ;;  %v2596_v4 = vmul.f32 2.0, %v3716_v44  ;;  %v5092_v26 = vpop.xlane.xlu0 %2102 }
 0x2e7   : > { %v2450_v60 = vpop.f32.mrf.mxu0  ;;  %v2791_v31 = vmax.f32 %v2727_v61, 0.0 }
 0x2e8   : > { %v2868_v24 = vmin.f32 %v2866_v17, %v2867_v54  ;;  %v2873_v14 = vmin.f32 %v2789_v21, %v2790_v34  ;;  %v2595_v23 = vmul.f32 2.0, %v2450_v60  ;;  %v2729_v7 = vadd.f32 %v4910_v47, %v2658_v5 }
 0x2e9   : > { %v3720_v52 = vpop.f32.mrf.mxu0  ;;  %v2660_v21 = vsub.f32 %v5027_v63, %v2596_v4 }
 0x2ea   : > { %v2869_v20 = vrot.slane %v2868_v24, 2  ;;  %v2600_v0 = vmul.f32 2.0, %v3720_v52  ;;  %v4121_v28 = vpop.eup %4120  ;;  %v2874_v48 = vmin.f32 %v2873_v14, %v2791_v31  ;;  %v2659_v40 = vsub.f32 %v5049_v50, %v2595_v23 }
 0x2eb   : > { %v2463_v27 = vpop.f32.mrf.mxu0  ;;  %v2958_v44 = vmul.f32 0.6931472, %v4121_v28 }
 0x2ec   : > { %v2870_v58 = vmin.f32 %v2868_v24, %v2869_v20  ;;  %v2598_v36 = vmul.f32 2.0, %v2463_v27  ;;  %v2664_v39 = vsub.f32 %v5058_v62, %v2600_v0  ;;  %v2792_v62 = vmax.f32 %v2728_v3, 0.0  ;;  %v5098_v24 = vpop.xlane.xlu1 %2096 }
 0x2ed   : > { %v3721_v8 = vpop.f32.mrf.mxu0 }
 0x2ee   : > { %v2871_v1 = vrot.slane %v2870_v58, 1  ;;  %v2662_v32 = vsub.f32 %v4967_v33, %v2598_v36  ;;  %v2601_v25 = vmul.f32 2.0, %v3721_v8  ;;  %v2735_v50 = vadd.f32 %v4910_v47, %v2664_v39  ;;  %v2052_v36 = vpop.xlane.xlu0 %2051 }
 0x2ef   : > { %v2466_v29 = vpop.f32.mrf.mxu0  ;;  %v2875_v46 = vmin.f32 %v2874_v48, %v2792_v62  ;;  %v2597_v8 = vmul.f32 2.0, %v5065_v38 }
 0x2f0   : > { %v5085_v37 = vmin.f32 %v2870_v58, %v2871_v1  ;;  %v2599_v35 = vmul.f32 2.0, %v2466_v29  ;;  %v2733_v41 = vadd.f32 %v4910_v47, %v2662_v32  ;;  %v2665_v49 = vsub.f32 %v4988_v57, %v2601_v25  ;;  %v5115_v28 = vpop.xlane.xlu1 %2111 }
 0x2f1   : > { %v3724_v16 = vpop.f32.mrf.mxu0  ;;  %v4123_v43 = vpop.eup %4122  ;;  %v2730_v57 = vadd.f32 %v4910_v47, %v2659_v40  ;;  %v2793_v58 = vmax.f32 %v2729_v7, 0.0  ;;  %v2799_v0 = vmax.f32 %v2735_v50, 0.0  ;;  %v2731_v25 = vadd.f32 %v4910_v47, %v2660_v21 }
 0x2f2   : > { %v2936_v33 = vadd.f32 0.0001, %v5085_v37  ;;  %v2663_v51 = vsub.f32 %v2058_v59, %v2599_v35  ;;  %v4125_v56 = vpop.eup %4124  ;;  %v2946_v17 = vmul.f32 %v4123_v43, %v2927_v11  ;;  %v2797_v34 = vmax.f32 %v2733_v41, 0.0 }
 0x2f3   : > { %v2479_v54 = vpop.f32.mrf.mxu0  ;;  %v2960_v60 = vmul.f32 0.6931472, %v4125_v56  ;;  %v2736_v52 = vadd.f32 %v4910_v47, %v2665_v49  ;;  %v5109_v27 = vsel %vm3001_vm4, %v5085_v37, %v5068_v22  ;;  %v2604_v23 = vmul.f32 2.0, %v3724_v16  ;;  %v2076_v49 = vpop.xlane.xlu0 %2075 }
 0x2f4   : > { %4126 = vrcp.f32 %v2936_v33  ;;  %v2734_v13 = vadd.f32 %v4910_v47, %v2663_v51  ;;  %v2602_v9 = vmul.f32 2.0, %v2479_v54  ;;  %v2876_v31 = vmin.f32 %v2875_v46, %v2793_v58 }
 0x2f5   : > { %4128 = vlog2.f32 %v2946_v17  ;;  %v3725_v59 = vpop.f32.mrf.mxu0  ;;  %v5104_v15 = vsel %vm2997_vm2, %v2960_v60, %v2958_v44  ;;  %v2794_v3 = vmax.f32 %v2730_v57, 0.0  ;;  %v2800_v5 = vmax.f32 %v2736_v52, 0.0  ;;  %v5123_v57 = vpop.xlane.xlu1 %2105 }
 0x2f6   : > { %v2798_v20 = vmax.f32 %v2734_v13, 0.0  ;;  %v2666_v61 = vsub.f32 %v5020_v53, %v2602_v9  ;;  %v2668_v39 = vsub.f32 %v5007_v30, %v2604_v23  ;;  %v2605_v11 = vmul.f32 2.0, %v3725_v59 }
 0x2f7   : > { %v2482_v18 = vpop.f32.mrf.mxu0  ;;  %v2661_v43 = vsub.f32 %v2052_v36, %v2597_v8  ;;  %v2877_v33 = vmin.f32 %v2876_v31, %v2794_v3  ;;  %v2795_v62 = vmax.f32 %v2731_v25, 0.0  ;;  %v2928_v50 = vadd.f32 1.0, %v5085_v37 }
 0x2f8   : > { %v2886_v14 = vmin.f32 %v2797_v34, %v2798_v20  ;;  %v2737_v53 = vadd.f32 %v4910_v47, %v2666_v61  ;;  %v2603_v1 = vmul.f32 2.0, %v2482_v18  ;;  %v2739_v30 = vadd.f32 %v4910_v47, %v2668_v39 }
 0x2f9   : > { %v3728_v63 = vpop.f32.mrf.mxu0  ;;  %v2669_v7 = vsub.f32 %v2076_v49, %v2605_v11  ;;  %v2878_v59 = vmin.f32 %v2877_v33, %v2795_v62 }
 0x2fa   : > { %v2887_v32 = vmin.f32 %v2886_v14, %v2799_v0  ;;  %v2667_v22 = vsub.f32 %v5030_v10, %v2603_v1  ;;  %v2801_v48 = vmax.f32 %v2737_v53, 0.0  ;;  %v2608_v40 = vmul.f32 2.0, %v3728_v63 }
 0x2fb   : > { %v2495_v29 = vpop.f32.mrf.mxu0  ;;  %v2803_v18 = vmax.f32 %v2739_v30, 0.0  ;;  %v2740_v37 = vadd.f32 %v4910_v47, %v2669_v7 }
 0x2fc   : > { %v2888_v35 = vmin.f32 %v2887_v32, %v2800_v5  ;;  %v2606_v38 = vmul.f32 2.0, %v2495_v29  ;;  %v2738_v4 = vadd.f32 %v4910_v47, %v2667_v22  ;;  %v2672_v13 = vsub.f32 %v5041_v12, %v2608_v40  ;;  %v5138_v32 = vpop.xlane.xlu1 %2120 }
 0x2fd   : > { %v3729_v16 = vpop.f32.mrf.mxu0  ;;  %v2804_v22 = vmax.f32 %v2740_v37, 0.0 }
 0x2fe   : > { %v2670_v41 = vsub.f32 %v5052_v6, %v2606_v38  ;;  %v2889_v51 = vmin.f32 %v2888_v35, %v2801_v48  ;;  %v2802_v10 = vmax.f32 %v2738_v4, 0.0  ;;  %v2609_v56 = vmul.f32 2.0, %v3729_v16 }
 0x2ff   : > { %v2498_v17 = vpop.f32.mrf.mxu0  ;;  %v2732_v6 = vadd.f32 %v4910_v47, %v2661_v43  ;;  %v2743_v0 = vadd.f32 %v4910_v47, %v2672_v13 }
 0x300   : > { %v2607_v54 = vmul.f32 2.0, %v2498_v17  ;;  %v2741_v60 = vadd.f32 %v4910_v47, %v2670_v41  ;;  %v2890_v34 = vmin.f32 %v2889_v51, %v2802_v10  ;;  %v2673_v52 = vsub.f32 %v5060_v45, %v2609_v56  ;;  %v2115_v30 = vpop.xlane.xlu1 %2114 }
 0x301   : > { %v4127_v44 = vpop.eup %4126  ;;  %v3732_v9 = vpop.f32.mrf.mxu0  ;;  %v2796_v8 = vmax.f32 %v2732_v6, 0.0  ;;  %v2807_v39 = vmax.f32 %v2743_v0, 0.0 }
 0x302   : > { %v4129_v46 = vpop.eup %4128  ;;  %v2671_v20 = vsub.f32 %v5076_v19, %v2607_v54  ;;  %v2948_v21 = vmul.f32 %v4127_v44, %v2928_v50  ;;  %v2612_v23 = vmul.f32 2.0, %v3732_v9  ;;  %v2805_v53 = vmax.f32 %v2741_v60, 0.0 }
 0x303   : > { %v2511_v61 = vpop.f32.mrf.mxu0  ;;  %v2962_v58 = vmul.f32 0.6931472, %v4129_v46  ;;  %v2891_v1 = vmin.f32 %v2890_v34, %v2803_v18  ;;  %v2744_v63 = vadd.f32 %v4910_v47, %v2673_v52  ;;  %v2879_v25 = vmin.f32 %v2878_v59, %v2796_v8 }
 0x304   : > { %v2610_v12 = vmul.f32 2.0, %v2511_v61  ;;  %v2742_v14 = vadd.f32 %v4910_v47, %v2671_v20  ;;  %4130 = vlog2.f32 %v2948_v21  ;;  %v2676_v11 = vsub.f32 %v5098_v24, %v2612_v23  ;;  %v2118_v0 = vpop.xlane.xlu1 %2117 }
 0x305   : > { %v3733_v36 = vpop.f32.mrf.mxu0  ;;  %v5135_v19 = vsel %vm2999_vm3, %v2962_v58, %v5104_v15  ;;  %v2100_v15 = vpop.xlane.xlu0 %2099  ;;  %v2892_v4 = vmin.f32 %v2891_v1, %v2804_v22  ;;  %v2808_v40 = vmax.f32 %v2744_v63, 0.0  ;;  %v2880_v10 = vrot.slane %v2879_v25, 4 }
 0x306   : > { %v2674_v45 = vsub.f32 %v5071_v2, %v2610_v12  ;;  %v2806_v31 = vmax.f32 %v2742_v14, 0.0  ;;  %v2613_v3 = vmul.f32 2.0, %v3733_v36  ;;  %v2747_v56 = vadd.f32 %v4910_v47, %v2676_v11 }
 0x307   : > { %v2514_v5 = vpop.f32.mrf.mxu0  ;;  %v2893_v44 = vrot.slane %v2892_v4, 4  ;;  %v2881_v59 = vmin.f32 %v2879_v25, %v2880_v10 }
 0x308   : > { %v2611_v29 = vmul.f32 2.0, %v2514_v5  ;;  %v2899_v35 = vmin.f32 %v2805_v53, %v2806_v31  ;;  %v2745_v2 = vadd.f32 %v4910_v47, %v2674_v45  ;;  %v2677_v43 = vsub.f32 %v2100_v15, %v2613_v3 }
 0x309   : > { %v3736_v38 = vpop.f32.mrf.mxu0  ;;  %v2811_v60 = vmax.f32 %v2747_v56, 0.0  ;;  %v2894_v18 = vmin.f32 %v2892_v4, %v2893_v44  ;;  %v2882_v36 = vrot.slane %v2881_v59, 2  ;;  %v2124_v4 = vpop.xlane.xlu1 %2123 }
 0x30a   : > { %v2675_v48 = vsub.f32 %v5078_v42, %v2611_v29  ;;  %v2900_v16 = vmin.f32 %v2899_v35, %v2807_v39  ;;  %v2616_v49 = vmul.f32 2.0, %v3736_v38  ;;  %v2809_v17 = vmax.f32 %v2745_v2, 0.0 }
 0x30b   : > { %v2527_v33 = vpop.f32.mrf.mxu0  ;;  %v2748_v13 = vadd.f32 %v4910_v47, %v2677_v43  ;;  %v2895_v3 = vrot.slane %v2894_v18, 2 }
 0x30c   : > { %v2746_v41 = vadd.f32 %v4910_v47, %v2675_v48  ;;  %v2614_v51 = vmul.f32 2.0, %v2527_v33  ;;  %v2901_v24 = vmin.f32 %v2900_v16, %v2808_v40  ;;  %v2680_v46 = vsub.f32 %v5083_v55, %v2616_v49 }
 0x30d   : > { %v3737_v62 = vpop.f32.mrf.mxu0  ;;  %v2812_v37 = vmax.f32 %v2748_v13, 0.0  ;;  %v2883_v48 = vmin.f32 %v2881_v59, %v2882_v36  ;;  %v2896_v43 = vmin.f32 %v2894_v18, %v2895_v3 }
 0x30e   : > { %v2810_v7 = vmax.f32 %v2746_v41, 0.0  ;;  %v2678_v54 = vsub.f32 %v5092_v26, %v2614_v51  ;;  %v2617_v42 = vmul.f32 2.0, %v3737_v62  ;;  %v2902_v50 = vmin.f32 %v2901_v24, %v2809_v17 }
 0x30f   : > { %v2530_v9 = vpop.f32.mrf.mxu0  ;;  %v2751_v14 = vadd.f32 %v4910_v47, %v2680_v46  ;;  %v2884_v24 = vrot.slane %v2883_v48, 1 }
 0x310   : > { %v2615_v6 = vmul.f32 2.0, %v2530_v9  ;;  %v2903_v34 = vmin.f32 %v2902_v50, %v2810_v7  ;;  %v2749_v61 = vadd.f32 %v4910_v47, %v2678_v54  ;;  %v2681_v21 = vsub.f32 %v5115_v28, %v2617_v42 }
 0x311   : > { %v3740_v52 = vpop.f32.mrf.mxu0  ;;  %v4131_v20 = vpop.eup %4130  ;;  %v2815_v39 = vmax.f32 %v2751_v14, 0.0  ;;  %v2885_v50 = vmin.f32 %v2883_v48, %v2884_v24 }
 0x312   : > { %v2679_v26 = vsub.f32 %v5123_v57, %v2615_v6  ;;  %v2904_v12 = vmin.f32 %v2903_v34, %v2811_v60  ;;  %v2620_v53 = vmul.f32 2.0, %v3740_v52  ;;  %v2964_v1 = vmul.f32 0.6931472, %v4131_v20 }
 0x313   : > { %v2543_v58 = vpop.f32.mrf.mxu0  ;;  %v2813_v63 = vmax.f32 %v2749_v61, 0.0  ;;  %v2752_v28 = vadd.f32 %v4910_v47, %v2681_v21  ;;  %v2937_v60 = vadd.f32 0.0001, %v2885_v50  ;;  %v3093_v18 = vsel %vm3003_vm5, %v2885_v50, %v5109_v27 }
 0x314   : > { %v2750_v55 = vadd.f32 %v4910_v47, %v2679_v26  ;;  %v2618_v23 = vmul.f32 2.0, %v2543_v58  ;;  %v2905_v8 = vmin.f32 %v2904_v12, %v2812_v37  ;;  %v5156_v29 = vsel %vm3001_vm4, %v2964_v1, %v5135_v19 }
 0x315   : > { %v3741_v45 = vpop.f32.mrf.mxu0  ;;  %v2684_v38 = vsub.f32 %v5138_v32, %v2620_v53  ;;  %v2816_v40 = vmax.f32 %v2752_v28, 0.0  ;;  %4132 = vrcp.f32 %v2937_v60  ;;  %v2929_v36 = vadd.f32 1.0, %v2885_v50 }
 0x316   : > { %v2814_v31 = vmax.f32 %v2750_v55, 0.0  ;;  %v2682_v57 = vsub.f32 %v2115_v30, %v2618_v23  ;;  %v2906_v5 = vrot.slane %v2905_v8, 4  ;;  %v2621_v25 = vmul.f32 2.0, %v3741_v45 }
 0x317   : > { %v2546_v22 = vpop.f32.mrf.mxu0  ;;  %v2755_v56 = vadd.f32 %v4910_v47, %v2684_v38  ;;  %v2897_v30 = vrot.slane %v2896_v43, 1 }
 0x318   : > { %v2912_v35 = vmin.f32 %v2813_v63, %v2814_v31  ;;  %v2753_v11 = vadd.f32 %v4910_v47, %v2682_v57  ;;  %v2907_v2 = vmin.f32 %v2905_v8, %v2906_v5  ;;  %v2619_v15 = vmul.f32 2.0, %v2546_v22 }
 0x319   : > { %v2685_v41 = vsub.f32 %v2124_v4, %v2621_v25  ;;  %v2819_v42 = vmax.f32 %v2755_v56, 0.0  ;;  %v2898_v13 = vmin.f32 %v2896_v43, %v2897_v30 }
 0x31a   : > { %v2913_v16 = vmin.f32 %v2912_v35, %v2815_v39  ;;  %v2908_v33 = vrot.slane %v2907_v2, 2  ;;  %v2683_v49 = vsub.f32 %v2118_v0, %v2619_v15  ;;  %v2817_v51 = vmax.f32 %v2753_v11, 0.0 }
 0x31b   : > { %v2756_v32 = vadd.f32 %v4910_v47, %v2685_v41  ;;  %v2938_v34 = vadd.f32 0.0001, %v2898_v13  ;;  %v3094_v12 = vsel %vm3005_vm6, %v2898_v13, %v3093_v18  ;;  %v2930_v53 = vadd.f32 1.0, %v2898_v13 }
 0x31c   : > { %v2914_v10 = vmin.f32 %v2913_v16, %v2816_v40  ;;  %v2909_v19 = vmin.f32 %v2907_v2, %v2908_v33  ;;  %v2754_v17 = vadd.f32 %v4910_v47, %v2683_v49 }
 0x31d   : > { %v2820_v9 = vmax.f32 %v2756_v32, 0.0  ;;  %4134 = vrcp.f32 %v2938_v34 }
 0x31e   : > { %v2915_v62 = vmin.f32 %v2914_v10, %v2817_v51  ;;  %v2818_v7 = vmax.f32 %v2754_v17, 0.0  ;;  %v2910_v54 = vrot.slane %v2909_v19, 1 }
 0x320   : > { %v2916_v44 = vmin.f32 %v2915_v62, %v2818_v7  ;;  %v2911_v6 = vmin.f32 %v2909_v19, %v2910_v54 }
 0x322   : > { %v2917_v46 = vmin.f32 %v2916_v44, %v2819_v42  ;;  %v2939_v20 = vadd.f32 0.0001, %v2911_v6  ;;  %v3095_v58 = vsel %vm3007_vm7, %v2911_v6, %v3094_v12  ;;  %v4133_v55 = vpop.eup %4132  ;;  %v2931_v45 = vadd.f32 1.0, %v2911_v6 }
 0x323   : > { %v2950_v1 = vmul.f32 %v4133_v55, %v2929_v36 }
 0x324   : > { %v2918_v59 = vmin.f32 %v2917_v46, %v2820_v9  ;;  %4136 = vrcp.f32 %v2939_v20 }
 0x326   : > { %v2919_v52 = vrot.slane %v2918_v59, 4 }
 0x328   : > { %v2920_v61 = vmin.f32 %v2918_v59, %v2919_v52 }
 0x32a   : > { %v2921_v47 = vrot.slane %v2920_v61, 2  ;;  %v4135_v23 = vpop.eup %4134 }
 0x32b   : > { %v2952_v27 = vmul.f32 %v4135_v23, %v2930_v53 }
 0x32c   : > { %v2922_v21 = vmin.f32 %v2920_v61, %v2921_v47 }
 0x32e   : > { %v2923_v26 = vrot.slane %v2922_v21, 1 }
 0x330   : > { %v2924_v37 = vmin.f32 %v2922_v21, %v2923_v26 }
 0x331   : > { %v4137_v8 = vpop.eup %4136 }
 0x332   : > { %v2940_v0 = vadd.f32 0.0001, %v2924_v37  ;;  %v3096_v14 = vsel %vm3009_vm8, %v2924_v37, %v3095_v58  ;;  %v2954_v63 = vmul.f32 %v4137_v8, %v2931_v45  ;;  %v2932_v28 = vadd.f32 1.0, %v2924_v37 }
 0x333   : > { %3098 = vst [vmem:[%s335_s17] sm:$0xff] %v3096_v14 }
 0x334   : > { %4138 = vrcp.f32 %v2940_v0 }
 0x335   : > { %4140 = vlog2.f32 %v2950_v1 }
 0x336   : > { %4142 = vlog2.f32 %v2952_v27 }
 0x337   : > { %4144 = vlog2.f32 %v2954_v63 }
 0x341   : > { %v4139_v31 = vpop.eup %4138 }
 0x342   : > { %v2956_v57 = vmul.f32 %v4139_v31, %v2932_v28  ;;  %v4141_v3 = vpop.eup %4140 }
 0x343   : > { %v4143_v5 = vpop.eup %4142  ;;  %v2966_v22 = vmul.f32 0.6931472, %v4141_v3 }
 0x344   : > { %4146 = vlog2.f32 %v2956_v57  ;;  %v4145_v25 = vpop.eup %4144  ;;  %v2968_v39 = vmul.f32 0.6931472, %v4143_v5 }
 0x345   : > { %v2970_v35 = vmul.f32 0.6931472, %v4145_v25  ;;  %v3004_v2 = vsel %vm3003_vm5, %v2966_v22, %v5156_v29 }
 0x346   : > { %v3006_v15 = vsel %vm3005_vm6, %v2968_v39, %v3004_v2 }
 0x347   : > { %v3008_v48 = vsel %vm3007_vm7, %v2970_v35, %v3006_v15 }
 0x351   : > { %v4147_v11 = vpop.eup %4146 }
 0x352   : > { %v2972_v38 = vmul.f32 0.6931472, %v4147_v11 }
 0x354   : > { %v3010_v4 = vsel %vm3009_vm8, %v2972_v38, %v3008_v48 }
 0x355   : > { %3775 = vmatmul.mubr.f32.vlgmr.msra.gmra.mxu1 %v3010_v4 }
 0x356   : > { %4162 = shalt.err (!%p4159_p3)
}
 0x357   : > { %s4163_s21 = scalar_lea.hbm %s3119_s24, 128  ;;  %s4167_s17 = scalar_lea.hbm %s5232_s9, 256 }
 0x358   : > { %p4164_p4 = scmp.ne.s32.totalorder %s3119_s24, %s4163_s21  ;;  %p4168_p9 = scmp.lt.s32.totalorder %s3119_s24, %s5232_s9 }
 0x359   : > { %p4169_p10 = scmp.lt.s32.totalorder %s4167_s17, %s4163_s21 }
 0x35a   : > { %p4165_p7 = pnand %p4164_p4, %p4302_p5 }
 0x35b   : > { %p4170_p11 = por %p4169_p10, %p4168_p9 }
 0x35c   : > { %p4166_p8 = pneg %p4165_p7 }
 0x35e   : > { %p4171_p12 = pnand %p4170_p11, %p4166_p8 }
 0x360   : > { %4174 = shalt.err (!%p4171_p12)
}
 0x361   : > { %3781 = dma.vmem_to_hbm [thread:$0]  (%p4302_p5), %s3122_s25, 128, %s3119_s24, %s3105_s26  }
 0x362   : > { %p343_p13 = scmp.lt.s32.totalorder %s4285_s13, 1 }
 0x364   : > { %s5244_s13 = smov (!%p343_p13, %s4285_s13), 1 }
 0x365   : > { %s3212_s0 = sshll.u32 %s5244_s13, 3 }
 0x366   : > { %s346_s29 = scalar_lea.vmem %s5231_s8, %s3212_s0 }
 0x415   : > { %v3078_v29 = vpop.f32.mrf.mxu1 }
 0x416   : > { %3099 = vst [vmem:[%s346_s29] sm:$0xff] %v3078_v29 }
 0x417   : > { %v3776_v40 = vpop.f32.mrf.mxu1 }
 0x418 PF: > { %p3787_p0 = scmp.ge.s32.totalorder %s4209_s12, 2  ;;  %s3140_s21 = sand.u32 1, %s4197_s30  }
 0x419   : > { %s3141_s19 = scalar_lea.sflag [#allocation3], %s3140_s21 }
 0x41a   : > { %p3784_p1 = pnand %p3787_p0, %p4306_p6 }
 0x41c   : > { %p3785_p2 = pneg %p3784_p1 }
 0x41e   : > { %4192 = dma.done.wait (%p3785_p2), %s3141_s19, 128  }
 0x41f   : > { %4194 = vsyncadd (%p3785_p2), %s3141_s19, 4294967168  ;;  %p20_p5 = scmp.ge.s32.totalorder %s4289_s15, 4   ;;  %s5237_s30 = smov %s4201_s10 }
 0x420   : > { %s5238_s10 = smov %s4205_s11  ;;  %s5239_s11 = smov %s4300_s18 }
 0x421   : > { %s5240_s12 = smov %s4289_s15  ;;  %22 = sbr.rel (!%p20_p5) target bundleno = 5 (0x5), region = 99 }
 0x426   :  { %3146 = vsyncpa [#allocation3], 1 }
 0x427   :  { %3148 = vsyncpa [#allocation3 + $0x1], 1 }

</bundles_post_ra>
